<compile_context>
chip_gen: v5e
topology: v5e:2x2
jax: 0.10.0
libtpu: 0.0.40
codegen_flags: <defaults>
</compile_context>

<pallas_src>
import jax
import jax.numpy as jnp
from jax import lax
from jax.experimental import pallas as pl
from jax.experimental.pallas import tpu as pltpu


def _round_up(x, m):
    return ((x + m - 1) // m) * m


def highway_kernel(x_ref, w_ref, b_ref, o_ref):
    """One row-tile of the full highway stack.

    x_ref : (tn, Hp)       bf16  input rows (lane-dense, feature-padded)
    w_ref : (L, Hp, 3*Hp)  bf16  fused [gate | nonlinear | linear] weights
    b_ref : (L, 1, 3*Hp)   f32   fused biases
    o_ref : (tn, Hp)       bf16  output rows
    """
    num_layers = w_ref.shape[0]
    hp = x_ref.shape[1]

    def body(l, x):
        # Single fused MXU matmul per layer: bf16 operands, f32 accumulation.
        y = jnp.dot(x, w_ref[l], preferred_element_type=jnp.float32) + b_ref[l]
        gate_in = y[:, 0 * hp:1 * hp]
        nonlinear = jnp.maximum(y[:, 1 * hp:2 * hp], 0.0)
        linear = y[:, 2 * hp:3 * hp]
        # sigmoid = 1/(1+exp(-x)): exp and approx reciprocal both ride the EUP
        # slot -> no VALU Newton divide.  Padded columns stay exactly zero
        # because nonlinear == linear == 0 there regardless of the gate value.
        gate = pl.reciprocal(1.0 + jnp.exp(-gate_in), approx=True)
        # == gate*nonlinear + (1-gate)*linear, one fewer full-tile multiply.
        new_x = linear + gate * (nonlinear - linear)
        # TODO(synk): on v6e/v7x the elementwise gating could run in packed
        # bf16 for ~2x VPU throughput; kept f32 so the same kernel is exact on
        # v5e (no bf16 VALU/EUP).
        return new_x.astype(jnp.bfloat16)

    x = lax.fori_loop(0, num_layers, body, x_ref[...], unroll=True)
    o_ref[...] = x


def pack_highway_params(wn, bn, wl, bl, wg, bg):
    """Pad both feature axes to a lane-dense multiple of 128, fuse the three
    projections as [gate | nonlinear | linear] along the output axis and cast
    weights to bf16.  Call ONCE at parameter-load time (not per forward call).

    w*: (L, H, H) stored as (in, out);  b*: (L, 1, H).
    Returns (w_fused (L,Hp,3Hp) bf16, b_fused (L,1,3Hp) f32).
    """
    L, H, _ = wn.shape
    Hp = _round_up(H, 128)

    def pad_w(w):
        return jnp.pad(w, ((0, 0), (0, Hp - H), (0, Hp - H)))

    def pad_b(b):
        return jnp.pad(b, ((0, 0), (0, 0), (0, Hp - H)))

    w_fused = jnp.concatenate([pad_w(wg), pad_w(wn), pad_w(wl)], axis=2)
    b_fused = jnp.concatenate([pad_b(bg), pad_b(bn), pad_b(bl)], axis=2)
    return w_fused.astype(jnp.bfloat16), b_fused.astype(jnp.float32)


def highway_pallas(x, w_fused, b_fused, *, tn_max=512, out_dtype=None):
    """x: (N, H).  w_fused/b_fused from pack_highway_params.

    tn_max: 512 is a good default for every generation; on v5e/v6e (128 MiB
    VMEM) it can be raised to 1024 for very large N.
    """
    N, H = x.shape
    L, Hp, Hp3 = w_fused.shape
    assert Hp3 == 3 * Hp and Hp % 128 == 0 and H <= Hp
    out_dtype = x.dtype if out_dtype is None else out_dtype

    # Row tile: big enough to amortise the ~0.35us/step pipeline overhead,
    # split so the grid has >=2 steps when possible (v7x megacore: "parallel"
    # row axis shards across both TensorCores), multiple of 16 so bf16 rows
    # pack full sublanes, and never (much) larger than the row count.
    tn = min(tn_max, _round_up(pl.cdiv(N, 2), 16), _round_up(N, 8))
    tn = max(tn, 8)
    grid = (pl.cdiv(N, tn),)

    # Stream activations in bf16 (the matmul operands are bf16 anyway).  Rows
    # are NOT padded: the ragged last block is masked on writeback.  Feature
    # padding (only if H % 128 != 0) keeps every store a full 128-lane vst.
    if H == Hp:
        x_p = x if x.dtype == jnp.bfloat16 else x.astype(jnp.bfloat16)
    else:
        x_p = jnp.pad(x.astype(jnp.bfloat16), ((0, 0), (0, Hp - H)))

    # Cost estimate (advisory).
    flops = 2 * N * Hp * (3 * Hp) * L
    transcendentals = N * Hp * L                       # exp per element/layer
    bytes_accessed = (2 * N * Hp * 2                   # x in + out (bf16)
                      + L * Hp * 3 * Hp * 2            # fused bf16 weights
                      + L * 3 * Hp * 4)                # fused f32 biases

    # VMEM budget derived from the actual buffers (assume worst-case double
    # buffering), capped against physical VMEM with ~16 MiB headroom (v7x has
    # only 64 MiB, half of v5e/v6e).
    w_bytes = L * Hp * 3 * Hp * 2
    b_bytes = L * 3 * Hp * 4
    io_bytes = 2 * 2 * tn * Hp * 2                     # x + out, double-buffered
    work_bytes = 4 * tn * 3 * Hp * 4                   # fused f32 temporaries
    need = 2 * w_bytes + 2 * b_bytes + io_bytes + work_bytes
    try:
        phys_vmem = pltpu.get_tpu_info().vmem_capacity_bytes
    except Exception:
        phys_vmem = 64 * 1024 * 1024                   # v7x floor
    vmem_limit = int(min(phys_vmem - (16 << 20),
                         max(32 << 20, need + (8 << 20))))

    def run(single_buffer_weights):
        # Constant index_map -> weights/biases are DMA'd once and stay
        # resident; single-buffering them halves their VMEM footprint.
        const_mode = (dict(pipeline_mode=pl.Buffered(1))
                      if single_buffer_weights else {})
        return pl.pallas_call(
            highway_kernel,
            out_shape=jax.ShapeDtypeStruct((N, Hp), jnp.bfloat16),
            grid_spec=pltpu.PrefetchScalarGridSpec(
                num_scalar_prefetch=0,
                grid=grid,
                in_specs=[
                    pl.BlockSpec((tn, Hp), lambda i: (i, 0)),          # x rows
                    pl.BlockSpec((L, Hp, 3 * Hp), lambda i: (0, 0, 0),
                                 **const_mode),                        # fused W
                    pl.BlockSpec((L, 1, 3 * Hp), lambda i: (0, 0, 0),
                                 **const_mode),                        # fused b
                ],
                out_specs=pl.BlockSpec((tn, Hp), lambda i: (i, 0)),
            ),
            compiler_params=pltpu.CompilerParams(
                dimension_semantics=("parallel",),
                vmem_limit_bytes=vmem_limit,
            ),
            cost_estimate=pl.CostEstimate(
                flops=flops,
                transcendentals=transcendentals,
                bytes_accessed=bytes_accessed,
            ),
        )(x_p, w_fused, b_fused)

    try:
        out_p = run(single_buffer_weights=True)
    except Exception:
        # TODO(synk): pipeline_mode=pl.Buffered(1) unsupported on this JAX
        # version; fall back to default double-buffered constant weights.
        out_p = run(single_buffer_weights=False)

    out = out_p if Hp == H else out_p[:, :H]
    return out.astype(out_dtype)


def highway_ref_f32(x, wn, bn, wl, bl, wg, bg):
    """Pure-JAX f32 reference mirroring the PyTorch forward exactly."""
    L = wn.shape[0]
    for l in range(L):
        gate = jax.nn.sigmoid(x @ wg[l] + bg[l, 0])
        nonlinear = jax.nn.relu(x @ wn[l] + bn[l, 0])
        linear = x @ wl[l] + bl[l, 0]
        x = gate * nonlinear + (1.0 - gate) * linear
    return x


def highway_ref_bf16(x, wn, bn, wl, bl, wg, bg):
    """Reference with bf16 matmul operands / f32 accumulation (kernel math)."""
    L = wn.shape[0]

    def mm(a, w):
        return jnp.dot(a.astype(jnp.bfloat16), w.astype(jnp.bfloat16),
                       preferred_element_type=jnp.float32)

    for l in range(L):
        gate = jax.nn.sigmoid(mm(x, wg[l]) + bg[l, 0])
        nonlinear = jax.nn.relu(mm(x, wn[l]) + bn[l, 0])
        linear = mm(x, wl[l]) + bl[l, 0]
        x = linear + gate * (nonlinear - linear)
    return x


if __name__ == "__main__":
    N, H, L = 8, 32, 3  # batch rows, highway size, num_layers

    key = jax.random.PRNGKey(0)
    keys = jax.random.split(key, 7)
    bound = 1.0 / jnp.sqrt(H)  # nn.Linear default init range

    x = jax.random.normal(keys[0], (N, H), dtype=jnp.float32)
    # Weights stored already-transposed as (L, H_in, H_out); biases as (L, 1, H).
    wn = jax.random.uniform(keys[1], (L, H, H), jnp.float32, -bound, bound)
    bn = jax.random.uniform(keys[2], (L, 1, H), jnp.float32, -bound, bound)
    wl = jax.random.uniform(keys[3], (L, H, H), jnp.float32, -bound, bound)
    bl = jax.random.uniform(keys[4], (L, 1, H), jnp.float32, -bound, bound)
    wg = jax.random.uniform(keys[5], (L, H, H), jnp.float32, -bound, bound)
    bg = jax.random.uniform(keys[6], (L, 1, H), jnp.float32, -bound, bound)

    # Pack once (parameter-load time), then run the kernel.
    w_fused, b_fused = pack_highway_params(wn, bn, wl, bl, wg, bg)
    out = highway_pallas(x, w_fused, b_fused)
    out = jax.block_until_ready(out)

    assert out.shape == (N, H) and out.dtype == jnp.float32
    assert bool(jnp.all(jnp.isfinite(out)))

    # Check vs. a reference using the same bf16-operand matmul math.  Extra
    # slack (5e-3) covers the bf16 output store and the approx-reciprocal
    # sigmoid used in the kernel.
    ref_bf16 = highway_ref_bf16(x, wn, bn, wl, bl, wg, bg)
    assert jnp.allclose(out, ref_bf16, atol=5e-3, rtol=5e-3), \
        "mismatch vs bf16-matmul reference"

    # Looser semantic check vs. the exact f32 PyTorch-style forward.
    ref_f32 = highway_ref_f32(x, wn, bn, wl, bl, wg, bg)
    assert jnp.allclose(out, ref_f32, atol=1e-1, rtol=1e-1), \
        "mismatch vs f32 reference"

    print("KERNEL_OK")
</pallas_src>

<mosaic_0001>
module attributes {stable_mosaic.version = 11 : i64} {
  func.func @highway_kernel(%arg0: i32, %arg1: memref<8x128xbf16, #tpu.memory_space<vmem>>, %arg2: memref<3x128x384xbf16, #tpu.memory_space<vmem>>, %arg3: memref<3x1x384xf32, #tpu.memory_space<vmem>>, %arg4: memref<8x128xbf16, #tpu.memory_space<vmem>>) attributes {dimension_semantics = [#tpu.dimension_semantics<parallel>], iteration_bounds = array<i64: 1>, scalar_prefetch = 0 : i64, scratch_operands = 0 : i64, tpu.core_type = #tpu.core_type<tc>, window_params = [{transform_indices = @transform_0, window_bounds = array<i64: 8, 128>}, {pipeline_mode = #tpu.pipeline_mode<synchronous>, transform_indices = @transform_1, window_bounds = array<i64: 3, 128, 384>}, {pipeline_mode = #tpu.pipeline_mode<synchronous>, transform_indices = @transform_2, window_bounds = array<i64: 3, 1, 384>}, {transform_indices = @transform_3, window_bounds = array<i64: 8, 128>}]} {
    %c0 = arith.constant 0 : index
    %c0_0 = arith.constant 0 : index
    %0 = vector.load %arg1[%c0, %c0_0] : memref<8x128xbf16, #tpu.memory_space<vmem>>, vector<8x128xbf16>
    %c0_i32 = arith.constant 0 : i32
    %1 = arith.index_cast %c0_i32 : i32 to index
    %c0_1 = arith.constant 0 : index
    %c0_2 = arith.constant 0 : index
    %2 = vector.load %arg2[%1, %c0_1, %c0_2] : memref<3x128x384xbf16, #tpu.memory_space<vmem>>, vector<1x128x384xbf16>
    %3 = vector.shape_cast %2 : vector<1x128x384xbf16> to vector<128x384xbf16>
    %cst = arith.constant dense<0.000000e+00> : vector<8x384xf32>
    %4 = tpu.matmul %0, %3, %cst {dimension_numbers = #tpu.dot_dimension_numbers<[1], [0], [0], [1], [0, 0, 1, 1], [], []>} : vector<8x128xbf16>, vector<128x384xbf16>, vector<8x384xf32> -> vector<8x384xf32>
    %5 = arith.index_cast %c0_i32 : i32 to index
    %c0_3 = arith.constant 0 : index
    %c0_4 = arith.constant 0 : index
    %6 = vector.load %arg3[%5, %c0_3, %c0_4] : memref<3x1x384xf32, #tpu.memory_space<vmem>>, vector<1x1x384xf32>
    %7 = vector.shape_cast %6 : vector<1x1x384xf32> to vector<1x384xf32>
    %8 = vector.broadcast %7 : vector<1x384xf32> to vector<8x384xf32>
    %9 = arith.addf %4, %8 : vector<8x384xf32>
    %10 = vector.extract_strided_slice %9 {offsets = [0, 0], sizes = [8, 128], strides = [1, 1]} : vector<8x384xf32> to vector<8x128xf32>
    %11 = vector.extract_strided_slice %9 {offsets = [0, 128], sizes = [8, 128], strides = [1, 1]} : vector<8x384xf32> to vector<8x128xf32>
    %cst_5 = arith.constant 0.000000e+00 : f32
    %12 = vector.broadcast %cst_5 : f32 to vector<8x128xf32>
    %13 = arith.maximumf %11, %12 : vector<8x128xf32>
    %14 = vector.extract_strided_slice %9 {offsets = [0, 256], sizes = [8, 128], strides = [1, 1]} : vector<8x384xf32> to vector<8x128xf32>
    %cst_6 = arith.constant 0.000000e+00 : f32
    %15 = vector.broadcast %cst_6 : f32 to vector<8x128xf32>
    %16 = arith.subf %15, %10 : vector<8x128xf32>
    %17 = math.exp %16 : vector<8x128xf32>
    %cst_7 = arith.constant 1.000000e+00 : f32
    %18 = vector.broadcast %cst_7 : f32 to vector<8x128xf32>
    %19 = arith.addf %18, %17 : vector<8x128xf32>
    %20 = tpu.reciprocal %19 {approx = true} : vector<8x128xf32> -> vector<8x128xf32>
    %21 = arith.subf %13, %14 : vector<8x128xf32>
    %22 = arith.mulf %20, %21 : vector<8x128xf32>
    %23 = arith.addf %14, %22 : vector<8x128xf32>
    %24 = arith.truncf %23 : vector<8x128xf32> to vector<8x128xbf16>
    %c1_i32 = arith.constant 1 : i32
    %25 = arith.index_cast %c1_i32 : i32 to index
    %c0_8 = arith.constant 0 : index
    %c0_9 = arith.constant 0 : index
    %26 = vector.load %arg2[%25, %c0_8, %c0_9] : memref<3x128x384xbf16, #tpu.memory_space<vmem>>, vector<1x128x384xbf16>
    %27 = vector.shape_cast %26 : vector<1x128x384xbf16> to vector<128x384xbf16>
    %cst_10 = arith.constant dense<0.000000e+00> : vector<8x384xf32>
    %28 = tpu.matmul %24, %27, %cst_10 {dimension_numbers = #tpu.dot_dimension_numbers<[1], [0], [0], [1], [0, 0, 1, 1], [], []>} : vector<8x128xbf16>, vector<128x384xbf16>, vector<8x384xf32> -> vector<8x384xf32>
    %29 = arith.index_cast %c1_i32 : i32 to index
    %c0_11 = arith.constant 0 : index
    %c0_12 = arith.constant 0 : index
    %30 = vector.load %arg3[%29, %c0_11, %c0_12] : memref<3x1x384xf32, #tpu.memory_space<vmem>>, vector<1x1x384xf32>
    %31 = vector.shape_cast %30 : vector<1x1x384xf32> to vector<1x384xf32>
    %32 = vector.broadcast %31 : vector<1x384xf32> to vector<8x384xf32>
    %33 = arith.addf %28, %32 : vector<8x384xf32>
    %34 = vector.extract_strided_slice %33 {offsets = [0, 0], sizes = [8, 128], strides = [1, 1]} : vector<8x384xf32> to vector<8x128xf32>
    %35 = vector.extract_strided_slice %33 {offsets = [0, 128], sizes = [8, 128], strides = [1, 1]} : vector<8x384xf32> to vector<8x128xf32>
    %cst_13 = arith.constant 0.000000e+00 : f32
    %36 = vector.broadcast %cst_13 : f32 to vector<8x128xf32>
    %37 = arith.maximumf %35, %36 : vector<8x128xf32>
    %38 = vector.extract_strided_slice %33 {offsets = [0, 256], sizes = [8, 128], strides = [1, 1]} : vector<8x384xf32> to vector<8x128xf32>
    %cst_14 = arith.constant 0.000000e+00 : f32
    %39 = vector.broadcast %cst_14 : f32 to vector<8x128xf32>
    %40 = arith.subf %39, %34 : vector<8x128xf32>
    %41 = math.exp %40 : vector<8x128xf32>
    %cst_15 = arith.constant 1.000000e+00 : f32
    %42 = vector.broadcast %cst_15 : f32 to vector<8x128xf32>
    %43 = arith.addf %42, %41 : vector<8x128xf32>
    %44 = tpu.reciprocal %43 {approx = true} : vector<8x128xf32> -> vector<8x128xf32>
    %45 = arith.subf %37, %38 : vector<8x128xf32>
    %46 = arith.mulf %44, %45 : vector<8x128xf32>
    %47 = arith.addf %38, %46 : vector<8x128xf32>
    %48 = arith.truncf %47 : vector<8x128xf32> to vector<8x128xbf16>
    %c2_i32 = arith.constant 2 : i32
    %49 = arith.index_cast %c2_i32 : i32 to index
    %c0_16 = arith.constant 0 : index
    %c0_17 = arith.constant 0 : index
    %50 = vector.load %arg2[%49, %c0_16, %c0_17] : memref<3x128x384xbf16, #tpu.memory_space<vmem>>, vector<1x128x384xbf16>
    %51 = vector.shape_cast %50 : vector<1x128x384xbf16> to vector<128x384xbf16>
    %cst_18 = arith.constant dense<0.000000e+00> : vector<8x384xf32>
    %52 = tpu.matmul %48, %51, %cst_18 {dimension_numbers = #tpu.dot_dimension_numbers<[1], [0], [0], [1], [0, 0, 1, 1], [], []>} : vector<8x128xbf16>, vector<128x384xbf16>, vector<8x384xf32> -> vector<8x384xf32>
    %53 = arith.index_cast %c2_i32 : i32 to index
    %c0_19 = arith.constant 0 : index
    %c0_20 = arith.constant 0 : index
    %54 = vector.load %arg3[%53, %c0_19, %c0_20] : memref<3x1x384xf32, #tpu.memory_space<vmem>>, vector<1x1x384xf32>
    %55 = vector.shape_cast %54 : vector<1x1x384xf32> to vector<1x384xf32>
    %56 = vector.broadcast %55 : vector<1x384xf32> to vector<8x384xf32>
    %57 = arith.addf %52, %56 : vector<8x384xf32>
    %58 = vector.extract_strided_slice %57 {offsets = [0, 0], sizes = [8, 128], strides = [1, 1]} : vector<8x384xf32> to vector<8x128xf32>
    %59 = vector.extract_strided_slice %57 {offsets = [0, 128], sizes = [8, 128], strides = [1, 1]} : vector<8x384xf32> to vector<8x128xf32>
    %cst_21 = arith.constant 0.000000e+00 : f32
    %60 = vector.broadcast %cst_21 : f32 to vector<8x128xf32>
    %61 = arith.maximumf %59, %60 : vector<8x128xf32>
    %62 = vector.extract_strided_slice %57 {offsets = [0, 256], sizes = [8, 128], strides = [1, 1]} : vector<8x384xf32> to vector<8x128xf32>
    %cst_22 = arith.constant 0.000000e+00 : f32
    %63 = vector.broadcast %cst_22 : f32 to vector<8x128xf32>
    %64 = arith.subf %63, %58 : vector<8x128xf32>
    %65 = math.exp %64 : vector<8x128xf32>
    %cst_23 = arith.constant 1.000000e+00 : f32
    %66 = vector.broadcast %cst_23 : f32 to vector<8x128xf32>
    %67 = arith.addf %66, %65 : vector<8x128xf32>
    %68 = tpu.reciprocal %67 {approx = true} : vector<8x128xf32> -> vector<8x128xf32>
    %69 = arith.subf %61, %62 : vector<8x128xf32>
    %70 = arith.mulf %68, %69 : vector<8x128xf32>
    %71 = arith.addf %62, %70 : vector<8x128xf32>
    %72 = arith.truncf %71 : vector<8x128xf32> to vector<8x128xbf16>
    %c3_i32 = arith.constant 3 : i32
    %c0_24 = arith.constant 0 : index
    %c0_25 = arith.constant 0 : index
    %73 = vector.load %arg4[%c0_24, %c0_25] : memref<8x128xbf16, #tpu.memory_space<vmem>>, vector<8x128xbf16>
    tpu.vector_store %arg4[%c0_24, %c0_25], %72 {strides = array<i32>} : memref<8x128xbf16, #tpu.memory_space<vmem>>, vector<8x128xbf16>,
    return
  }
  func.func @transform_0(%arg0: i32) -> (i32, i32) {
    %c0_i32 = arith.constant 0 : i32
    %c0_i32_0 = arith.constant 0 : i32
    return %arg0, %c0_i32 : i32, i32
  }
  func.func @transform_1(%arg0: i32) -> (i32, i32, i32) {
    %c0_i32 = arith.constant 0 : i32
    %c0_i32_0 = arith.constant 0 : i32
    %c0_i32_1 = arith.constant 0 : i32
    %c0_i32_2 = arith.constant 0 : i32
    return %c0_i32, %c0_i32_0, %c0_i32_1 : i32, i32, i32
  }
  func.func @transform_2(%arg0: i32) -> (i32, i32, i32) {
    %c0_i32 = arith.constant 0 : i32
    %c0_i32_0 = arith.constant 0 : i32
    %c0_i32_1 = arith.constant 0 : i32
    %c0_i32_2 = arith.constant 0 : i32
    return %c0_i32, %c0_i32_0, %c0_i32_1 : i32, i32, i32
  }
  func.func @transform_3(%arg0: i32) -> (i32, i32) {
    %c0_i32 = arith.constant 0 : i32
    %c0_i32_0 = arith.constant 0 : i32
    return %arg0, %c0_i32 : i32, i32
  }
}

module attributes {stable_mosaic.version = 11 : i64} {
  func.func @highway_kernel(%arg0: i32, %arg1: memref<8x128xbf16, #tpu.memory_space<vmem>>, %arg2: memref<3x128x384xbf16, #tpu.memory_space<vmem>>, %arg3: memref<3x1x384xf32, #tpu.memory_space<vmem>>, %arg4: memref<8x128xbf16, #tpu.memory_space<vmem>>) attributes {dimension_semantics = [#tpu.dimension_semantics<parallel>], iteration_bounds = array<i64: 1>, scalar_prefetch = 0 : i64, scratch_operands = 0 : i64, tpu.core_type = #tpu.core_type<tc>, window_params = [{transform_indices = @transform_0, window_bounds = array<i64: 8, 128>}, {pipeline_mode = #tpu.pipeline_mode<synchronous>, transform_indices = @transform_1, window_bounds = array<i64: 3, 128, 384>}, {pipeline_mode = #tpu.pipeline_mode<synchronous>, transform_indices = @transform_2, window_bounds = array<i64: 3, 1, 384>}, {transform_indices = @transform_3, window_bounds = array<i64: 8, 128>}]} {
    %c0 = arith.constant 0 : index
    %c0_0 = arith.constant 0 : index
    %0 = vector.load %arg1[%c0, %c0_0] : memref<8x128xbf16, #tpu.memory_space<vmem>>, vector<8x128xbf16>
    %c0_i32 = arith.constant 0 : i32
    %1 = arith.index_cast %c0_i32 : i32 to index
    %c0_1 = arith.constant 0 : index
    %c0_2 = arith.constant 0 : index
    %2 = vector.load %arg2[%1, %c0_1, %c0_2] : memref<3x128x384xbf16, #tpu.memory_space<vmem>>, vector<1x128x384xbf16>
    %3 = vector.shape_cast %2 : vector<1x128x384xbf16> to vector<128x384xbf16>
    %cst = arith.constant dense<0.000000e+00> : vector<8x384xf32>
    %4 = tpu.matmul %0, %3, %cst {dimension_numbers = #tpu.dot_dimension_numbers<[1], [0], [0], [1], [0, 0, 1, 1], [], []>} : vector<8x128xbf16>, vector<128x384xbf16>, vector<8x384xf32> -> vector<8x384xf32>
    %5 = arith.index_cast %c0_i32 : i32 to index
    %c0_3 = arith.constant 0 : index
    %c0_4 = arith.constant 0 : index
    %6 = vector.load %arg3[%5, %c0_3, %c0_4] : memref<3x1x384xf32, #tpu.memory_space<vmem>>, vector<1x1x384xf32>
    %7 = vector.shape_cast %6 : vector<1x1x384xf32> to vector<1x384xf32>
    %8 = vector.broadcast %7 : vector<1x384xf32> to vector<8x384xf32>
    %9 = arith.addf %4, %8 : vector<8x384xf32>
    %10 = vector.extract_strided_slice %9 {offsets = [0, 0], sizes = [8, 128], strides = [1, 1]} : vector<8x384xf32> to vector<8x128xf32>
    %11 = vector.extract_strided_slice %9 {offsets = [0, 128], sizes = [8, 128], strides = [1, 1]} : vector<8x384xf32> to vector<8x128xf32>
    %cst_5 = arith.constant 0.000000e+00 : f32
    %12 = vector.broadcast %cst_5 : f32 to vector<8x128xf32>
    %13 = arith.maximumf %11, %12 : vector<8x128xf32>
    %14 = vector.extract_strided_slice %9 {offsets = [0, 256], sizes = [8, 128], strides = [1, 1]} : vector<8x384xf32> to vector<8x128xf32>
    %cst_6 = arith.constant 0.000000e+00 : f32
    %15 = vector.broadcast %cst_6 : f32 to vector<8x128xf32>
    %16 = arith.subf %15, %10 : vector<8x128xf32>
    %17 = math.exp %16 : vector<8x128xf32>
    %cst_7 = arith.constant 1.000000e+00 : f32
    %18 = vector.broadcast %cst_7 : f32 to vector<8x128xf32>
    %19 = arith.addf %18, %17 : vector<8x128xf32>
    %20 = tpu.reciprocal %19 {approx = true} : vector<8x128xf32> -> vector<8x128xf32>
    %21 = arith.subf %13, %14 : vector<8x128xf32>
    %22 = arith.mulf %20, %21 : vector<8x128xf32>
    %23 = arith.addf %14, %22 : vector<8x128xf32>
    %24 = arith.truncf %23 : vector<8x128xf32> to vector<8x128xbf16>
    %c1_i32 = arith.constant 1 : i32
    %25 = arith.index_cast %c1_i32 : i32 to index
    %c0_8 = arith.constant 0 : index
    %c0_9 = arith.constant 0 : index
    %26 = vector.load %arg2[%25, %c0_8, %c0_9] : memref<3x128x384xbf16, #tpu.memory_space<vmem>>, vector<1x128x384xbf16>
    %27 = vector.shape_cast %26 : vector<1x128x384xbf16> to vector<128x384xbf16>
    %cst_10 = arith.constant dense<0.000000e+00> : vector<8x384xf32>
    %28 = tpu.matmul %24, %27, %cst_10 {dimension_numbers = #tpu.dot_dimension_numbers<[1], [0], [0], [1], [0, 0, 1, 1], [], []>} : vector<8x128xbf16>, vector<128x384xbf16>, vector<8x384xf32> -> vector<8x384xf32>
    %29 = arith.index_cast %c1_i32 : i32 to index
    %c0_11 = arith.constant 0 : index
    %c0_12 = arith.constant 0 : index
    %30 = vector.load %arg3[%29, %c0_11, %c0_12] : memref<3x1x384xf32, #tpu.memory_space<vmem>>, vector<1x1x384xf32>
    %31 = vector.shape_cast %30 : vector<1x1x384xf32> to vector<1x384xf32>
    %32 = vector.broadcast %31 : vector<1x384xf32> to vector<8x384xf32>
    %33 = arith.addf %28, %32 : vector<8x384xf32>
    %34 = vector.extract_strided_slice %33 {offsets = [0, 0], sizes = [8, 128], strides = [1, 1]} : vector<8x384xf32> to vector<8x128xf32>
    %35 = vector.extract_strided_slice %33 {offsets = [0, 128], sizes = [8, 128], strides = [1, 1]} : vector<8x384xf32> to vector<8x128xf32>
    %cst_13 = arith.constant 0.000000e+00 : f32
    %36 = vector.broadcast %cst_13 : f32 to vector<8x128xf32>
    %37 = arith.maximumf %35, %36 : vector<8x128xf32>
    %38 = vector.extract_strided_slice %33 {offsets = [0, 256], sizes = [8, 128], strides = [1, 1]} : vector<8x384xf32> to vector<8x128xf32>
    %cst_14 = arith.constant 0.000000e+00 : f32
    %39 = vector.broadcast %cst_14 : f32 to vector<8x128xf32>
    %40 = arith.subf %39, %34 : vector<8x128xf32>
    %41 = math.exp %40 : vector<8x128xf32>
    %cst_15 = arith.constant 1.000000e+00 : f32
    %42 = vector.broadcast %cst_15 : f32 to vector<8x128xf32>
    %43 = arith.addf %42, %41 : vector<8x128xf32>
    %44 = tpu.reciprocal %43 {approx = true} : vector<8x128xf32> -> vector<8x128xf32>
    %45 = arith.subf %37, %38 : vector<8x128xf32>
    %46 = arith.mulf %44, %45 : vector<8x128xf32>
    %47 = arith.addf %38, %46 : vector<8x128xf32>
    %48 = arith.truncf %47 : vector<8x128xf32> to vector<8x128xbf16>
    %c2_i32 = arith.constant 2 : i32
    %49 = arith.index_cast %c2_i32 : i32 to index
    %c0_16 = arith.constant 0 : index
    %c0_17 = arith.constant 0 : index
    %50 = vector.load %arg2[%49, %c0_16, %c0_17] : memref<3x128x384xbf16, #tpu.memory_space<vmem>>, vector<1x128x384xbf16>
    %51 = vector.shape_cast %50 : vector<1x128x384xbf16> to vector<128x384xbf16>
    %cst_18 = arith.constant dense<0.000000e+00> : vector<8x384xf32>
    %52 = tpu.matmul %48, %51, %cst_18 {dimension_numbers = #tpu.dot_dimension_numbers<[1], [0], [0], [1], [0, 0, 1, 1], [], []>} : vector<8x128xbf16>, vector<128x384xbf16>, vector<8x384xf32> -> vector<8x384xf32>
    %53 = arith.index_cast %c2_i32 : i32 to index
    %c0_19 = arith.constant 0 : index
    %c0_20 = arith.constant 0 : index
    %54 = vector.load %arg3[%53, %c0_19, %c0_20] : memref<3x1x384xf32, #tpu.memory_space<vmem>>, vector<1x1x384xf32>
    %55 = vector.shape_cast %54 : vector<1x1x384xf32> to vector<1x384xf32>
    %56 = vector.broadcast %55 : vector<1x384xf32> to vector<8x384xf32>
    %57 = arith.addf %52, %56 : vector<8x384xf32>
    %58 = vector.extract_strided_slice %57 {offsets = [0, 0], sizes = [8, 128], strides = [1, 1]} : vector<8x384xf32> to vector<8x128xf32>
    %59 = vector.extract_strided_slice %57 {offsets = [0, 128], sizes = [8, 128], strides = [1, 1]} : vector<8x384xf32> to vector<8x128xf32>
    %cst_21 = arith.constant 0.000000e+00 : f32
    %60 = vector.broadcast %cst_21 : f32 to vector<8x128xf32>
    %61 = arith.maximumf %59, %60 : vector<8x128xf32>
    %62 = vector.extract_strided_slice %57 {offsets = [0, 256], sizes = [8, 128], strides = [1, 1]} : vector<8x384xf32> to vector<8x128xf32>
    %cst_22 = arith.constant 0.000000e+00 : f32
    %63 = vector.broadcast %cst_22 : f32 to vector<8x128xf32>
    %64 = arith.subf %63, %58 : vector<8x128xf32>
    %65 = math.exp %64 : vector<8x128xf32>
    %cst_23 = arith.constant 1.000000e+00 : f32
    %66 = vector.broadcast %cst_23 : f32 to vector<8x128xf32>
    %67 = arith.addf %66, %65 : vector<8x128xf32>
    %68 = tpu.reciprocal %67 {approx = true} : vector<8x128xf32> -> vector<8x128xf32>
    %69 = arith.subf %61, %62 : vector<8x128xf32>
    %70 = arith.mulf %68, %69 : vector<8x128xf32>
    %71 = arith.addf %62, %70 : vector<8x128xf32>
    %72 = arith.truncf %71 : vector<8x128xf32> to vector<8x128xbf16>
    %c3_i32 = arith.constant 3 : i32
    %c0_24 = arith.constant 0 : index
    %c0_25 = arith.constant 0 : index
    %73 = vector.load %arg4[%c0_24, %c0_25] : memref<8x128xbf16, #tpu.memory_space<vmem>>, vector<8x128xbf16>
    tpu.vector_store %arg4[%c0_24, %c0_25], %72 {strides = array<i32>} : memref<8x128xbf16, #tpu.memory_space<vmem>>, vector<8x128xbf16>,
    return
  }
  func.func @transform_0(%arg0: i32) -> (i32, i32) {
    %c0_i32 = arith.constant 0 : i32
    %c0_i32_0 = arith.constant 0 : i32
    return %arg0, %c0_i32 : i32, i32
  }
  func.func @transform_1(%arg0: i32) -> (i32, i32, i32) {
    %c0_i32 = arith.constant 0 : i32
    %c0_i32_0 = arith.constant 0 : i32
    %c0_i32_1 = arith.constant 0 : i32
    %c0_i32_2 = arith.constant 0 : i32
    return %c0_i32, %c0_i32_0, %c0_i32_1 : i32, i32, i32
  }
  func.func @transform_2(%arg0: i32) -> (i32, i32, i32) {
    %c0_i32 = arith.constant 0 : i32
    %c0_i32_0 = arith.constant 0 : i32
    %c0_i32_1 = arith.constant 0 : i32
    %c0_i32_2 = arith.constant 0 : i32
    return %c0_i32, %c0_i32_0, %c0_i32_1 : i32, i32, i32
  }
  func.func @transform_3(%arg0: i32) -> (i32, i32) {
    %c0_i32 = arith.constant 0 : i32
    %c0_i32_0 = arith.constant 0 : i32
    return %arg0, %c0_i32 : i32, i32
  }
}

</mosaic_0001>

<bundles_post_ra>
// kernel: tpu_custom_call.1
= control target key start
LH: loop header
LB: loop body
LE: loop exit
PB: predicated region body
PF: predicated region fallthrough
CT: control target
= control target key end

     0   :  { %8 = vsyncpa [#allocation3], 0  ;;  %s1257_s0 = inlined_call_operand.hbm [shape: bf16[8,128], index: 0, kind: input, shape index: {}]   ;;  %s1258_s1 = inlined_call_operand.hbm [shape: bf16[3,128,384], index: 1, kind: input, shape index: {}]   ;;  %s1259_s2 = inlined_call_operand.hbm [shape: f32[3,1,384], index: 2, kind: input, shape index: {}]   ;;  %s1260_s3 = inlined_call_operand.hbm [shape: bf16[8,128], index: 3, kind: output, shape index: {}]  }
   0x1   :  { %9 = vsyncpa [#allocation6], 0  ;;  %s26_s14 = sshll.u32 %s1258_s1, 4  ;;  %s27_s14 = int_to_ptr.hbm [resolvable:$true] %s26_s14 }
   0x2   :  { %10 = vsyncpa [#allocation4], 0  ;;  %s1217_s15 = smov [#allocation5]   ;;  %s16_s19 = sshll.u32 %s1257_s0, 4  ;;  %s17_s19 = int_to_ptr.hbm [resolvable:$true] %s16_s19 }
   0x3   :  { %s28_s16 = sshll.u32 %s1217_s15, 4  ;;  %s1218_s20 = smov 192   ;;  %s29_s16 = int_to_ptr.vmem [resolvable:$true] %s28_s16 }
   0x4   :  { %s1219_s21 = smov 12   ;;  %s1220_s22 = smov [#allocation2]  }
   0x5   :  { %34 = dma.hbm_to_vmem [thread:$0]  %s27_s14, 9216, %s29_s16, [#allocation6], %s1218_s20, %s1218_s20, %s1219_s21  }
   0x6   :  { %s18_s23 = sshll.u32 %s1220_s22, 4  ;;  %s39_s26 = sshll.u32 %s1259_s2, 4  ;;  %s19_s23 = int_to_ptr.vmem [resolvable:$true] %s18_s23  ;;  %s40_s26 = int_to_ptr.hbm [resolvable:$true] %s39_s26 }
   0x7   :  { %21 = dma.hbm_to_vmem [thread:$0]  %s17_s19, 64, %s19_s23, [#allocation3]  }
   0x8   :  { %s1221_s1 = smov [#allocation7]   ;;  %s1222_s28 = smov 48  }
   0x9   :  { %s41_s27 = sshll.u32 %s1221_s1, 4  ;;  %s1223_s29 = smov 3   ;;  %s42_s27 = int_to_ptr.vmem [resolvable:$true] %s41_s27 }
   0xa   :  { %47 = dma.hbm_to_vmem [thread:$0]  %s40_s26, 144, %s42_s27, [#allocation6], %s1222_s28, %s1222_s28, %s1223_s29  }
   0xb   :  { %1211 = dma.done.wait [#allocation3], 64  }
   0xc   :  { %1212 = vsyncadd [#allocation3], 4294967232 }
   0xd   :  { %1213 = dma.done.wait [#allocation6], 9360  }
   0xe   :  { %1214 = vsyncadd [#allocation6], 4294957936  ;;  %v821_v0 = vld [vmem:[#allocation5 + $0xa8] sm:$0xf]  ;;  %v1045_v1 = vld [vmem:[#allocation5 + $0xb0] sm:$0xf0] }
   0xf   :  { %v809_v2 = vld [vmem:[#allocation5 + $0x90] sm:$0xf]  ;;  %v822_v3 = vor.u32 %v1045_v1, %v821_v0  ;;  %v1042_v4 = vld [vmem:[#allocation5 + $0x98] sm:$0xf0]  ;;  %v1044_v8 = vld [vmem:[#allocation5 + $0xac] sm:$0xf] }
  0x10   :  { %v829_v5 = vld [vmem:[#allocation5 + $0xb0] sm:$0xf]  ;;  %v1046_v6 = vld [vmem:[#allocation5 + $0xb8] sm:$0xf0]  ;;  %v810_v9 = vor.u32 %v1042_v4, %v809_v2  ;;  %v823_v10 = vld [vmem:[#allocation5 + $0xb4] sm:$0xf0] }
  0x11   :  { %v830_v7 = vor.u32 %v1046_v6, %v829_v5  ;;  %229 = vmatpush.bf16.msra.mxu0 %v822_v3  ;;  %v817_v11 = vld [vmem:[#allocation5 + $0x98] sm:$0xf]  ;;  %v1043_v12 = vld [vmem:[#allocation5 + $0xa0] sm:$0xf0]  ;;  %v826_v15 = vor.u32 %v1044_v8, %v823_v10  ;;  %v1041_v17 = vld [vmem:[#allocation5 + $0x94] sm:$0xf] }
  0x12   :  { %v797_v13 = vld [vmem:[#allocation5 + $0x78] sm:$0xf]  ;;  %v1039_v14 = vld [vmem:[#allocation5 + $0x80] sm:$0xf0]  ;;  %v818_v16 = vor.u32 %v1043_v12, %v817_v11  ;;  %v811_v18 = vld [vmem:[#allocation5 + $0x9c] sm:$0xf0] }
  0x13   :  { %255 = vmatpush.bf16.msra.mxu2 %v830_v7  ;;  %v805_v19 = vld [vmem:[#allocation5 + $0x80] sm:$0xf]  ;;  %v1040_v20 = vld [vmem:[#allocation5 + $0x88] sm:$0xf0]  ;;  %242 = vmatpush.bf16.msra.mxu1 %v826_v15  ;;  %v814_v21 = vor.u32 %v1041_v17, %v811_v18  ;;  %v798_v22 = vor.u32 %v1039_v14, %v797_v13  ;;  %v1038_v23 = vld [vmem:[#allocation5 + $0x7c] sm:$0xf] }
  0x14   :  { %v799_v24 = vld [vmem:[#allocation5 + $0x84] sm:$0xf0]  ;;  %v785_v25 = vld [vmem:[#allocation5 + $0x60] sm:$0xf]  ;;  %v1036_v26 = vld [vmem:[#allocation5 + $0x68] sm:$0xf0]  ;;  %v806_v27 = vor.u32 %v1040_v20, %v805_v19 }
  0x15   :  { %230 = vmatpush.bf16.msra.mxu0 %v810_v9  ;;  %v793_v28 = vld [vmem:[#allocation5 + $0x68] sm:$0xf]  ;;  %v1037_v29 = vld [vmem:[#allocation5 + $0x70] sm:$0xf0]  ;;  %v802_v30 = vor.u32 %v1038_v23, %v799_v24  ;;  %v786_v31 = vor.u32 %v1036_v26, %v785_v25  ;;  %v1035_v32 = vld [vmem:[#allocation5 + $0x64] sm:$0xf] }
  0x16   :  { %v787_v33 = vld [vmem:[#allocation5 + $0x6c] sm:$0xf0]  ;;  %v773_v34 = vld [vmem:[#allocation5 + $0x48] sm:$0xf]  ;;  %v1033_v35 = vld [vmem:[#allocation5 + $0x50] sm:$0xf0]  ;;  %v794_v36 = vor.u32 %v1037_v29, %v793_v28 }
  0x17   :  { %256 = vmatpush.bf16.msra.mxu2 %v818_v16  ;;  %243 = vmatpush.bf16.msra.mxu1 %v814_v21  ;;  %v781_v37 = vld [vmem:[#allocation5 + $0x50] sm:$0xf]  ;;  %v1034_v38 = vld [vmem:[#allocation5 + $0x58] sm:$0xf0]  ;;  %v790_v39 = vor.u32 %v1035_v32, %v787_v33  ;;  %v774_v40 = vor.u32 %v1033_v35, %v773_v34  ;;  %v1032_v42 = vld [vmem:[#allocation5 + $0x4c] sm:$0xf] }
  0x18   :  { %v761_v41 = vld [vmem:[#allocation5 + $0x30] sm:$0xf]  ;;  %v775_v43 = vld [vmem:[#allocation5 + $0x54] sm:$0xf0]  ;;  %v1030_v44 = vld [vmem:[#allocation5 + $0x38] sm:$0xf0]  ;;  %v782_v45 = vor.u32 %v1034_v38, %v781_v37 }
  0x19   :  { %231 = vmatpush.bf16.msra.mxu0 %v798_v22  ;;  %v917_v46 = vld [vmem:[#allocation5 + $0x168] sm:$0xf]  ;;  %v1069_v47 = vld [vmem:[#allocation5 + $0x170] sm:$0xf0]  ;;  %v769_v48 = vld [vmem:[#allocation5 + $0x38] sm:$0xf]  ;;  %v778_v51 = vor.u32 %v1032_v42, %v775_v43  ;;  %v762_v52 = vor.u32 %v1030_v44, %v761_v41 }
  0x1a   :  { %v1031_v49 = vld [vmem:[#allocation5 + $0x40] sm:$0xf0]  ;;  %v918_v50 = vor.u32 %v1069_v47, %v917_v46  ;;  %v1029_v53 = vld [vmem:[#allocation5 + $0x34] sm:$0xf]  ;;  %v763_v54 = vld [vmem:[#allocation5 + $0x3c] sm:$0xf0] }
  0x1b   :  { %257 = vmatpush.bf16.msra.mxu2 %v806_v27  ;;  %244 = vmatpush.bf16.msra.mxu1 %v802_v30  ;;  %v749_v55 = vld [vmem:[#allocation5 + $0x18] sm:$0xf]  ;;  %v1027_v56 = vld [vmem:[#allocation5 + $0x20] sm:$0xf0]  ;;  %v770_v57 = vor.u32 %v1031_v49, %v769_v48  ;;  %v757_v58 = vld [vmem:[#allocation5 + $0x20] sm:$0xf]  ;;  %v766_v60 = vor.u32 %v1029_v53, %v763_v54 }
  0x1c   :  { %448 = vmatpush.bf16.msra.mxu3 %v918_v50  ;;  %v1028_v59 = vld [vmem:[#allocation5 + $0x28] sm:$0xf0]  ;;  %v750_v61 = vor.u32 %v1027_v56, %v749_v55  ;;  %v1026_v62 = vld [vmem:[#allocation5 + $0x1c] sm:$0xf]  ;;  %v751_v63 = vld [vmem:[#allocation5 + $0x24] sm:$0xf0] }
  0x1d   :  { %232 = vmatpush.bf16.msra.mxu0 %v786_v31  ;;  %v737_v0 = vld [vmem:[#allocation5] sm:$0xf]  ;;  %v1024_v1 = vld [vmem:[#allocation5 + $0x8] sm:$0xf0]  ;;  %v758_v2 = vor.u32 %v1028_v59, %v757_v58  ;;  %v745_v3 = vld [vmem:[#allocation5 + $0x8] sm:$0xf]  ;;  %v754_v7 = vor.u32 %v1026_v62, %v751_v63 }
  0x1e   :  { %v1025_v4 = vld [vmem:[#allocation5 + $0x10] sm:$0xf0]  ;;  %v1068_v5 = vld [vmem:[#allocation5 + $0x16c] sm:$0xf]  ;;  %v919_v6 = vld [vmem:[#allocation5 + $0x174] sm:$0xf0]  ;;  %v738_v8 = vor.u32 %v1024_v1, %v737_v0 }
  0x1f   :  { %258 = vmatpush.bf16.msra.mxu2 %v794_v36  ;;  %245 = vmatpush.bf16.msra.mxu1 %v790_v39  ;;  %v1023_v9 = vld [vmem:[#allocation5 + $0x4] sm:$0xf]  ;;  %v739_v10 = vld [vmem:[#allocation5 + $0xc] sm:$0xf0]  ;;  %v746_v11 = vor.u32 %v1025_v4, %v745_v3  ;;  %v922_v12 = vor.u32 %v1068_v5, %v919_v6  ;;  %v1070_v14 = vld [vmem:[#allocation5 + $0x178] sm:$0xf0] }
  0x20   :  { %v925_v13 = vld [vmem:[#allocation5 + $0x170] sm:$0xf]  ;;  %v742_v15 = vor.u32 %v1023_v9, %v739_v10  ;;  %v60_v16 = vld [vmem:[#allocation2] sm:$0xf]  ;;  %v1065_v20 = vld [vmem:[#allocation5 + $0x154] sm:$0xf] }
  0x21   :  { %233 = vmatpush.bf16.msra.mxu0 %v774_v40  ;;  %v926_v17 = vor.u32 %v1070_v14, %v925_v13  ;;  %v905_v18 = vld [vmem:[#allocation5 + $0x150] sm:$0xf]  ;;  %v1066_v19 = vld [vmem:[#allocation5 + $0x158] sm:$0xf0]  ;;  %v907_v22 = vld [vmem:[#allocation5 + $0x15c] sm:$0xf0] }
  0x22   :  { %v906_v21 = vor.u32 %v1066_v19, %v905_v18  ;;  %v913_v23 = vld [vmem:[#allocation5 + $0x158] sm:$0xf]  ;;  %v1067_v24 = vld [vmem:[#allocation5 + $0x160] sm:$0xf0]  ;;  %v910_v25 = vor.u32 %v1065_v20, %v907_v22  ;;  %v1062_v29 = vld [vmem:[#allocation5 + $0x13c] sm:$0xf] }
  0x23   :  { %259 = vmatpush.bf16.msra.mxu2 %v782_v45  ;;  %246 = vmatpush.bf16.msra.mxu1 %v778_v51  ;;  %v914_v26 = vor.u32 %v1067_v24, %v913_v23  ;;  %v893_v27 = vld [vmem:[#allocation5 + $0x138] sm:$0xf]  ;;  %v1063_v28 = vld [vmem:[#allocation5 + $0x140] sm:$0xf0]  ;;  %v895_v31 = vld [vmem:[#allocation5 + $0x144] sm:$0xf0] }
  0x24   :  { %449 = vmatpush.bf16.msra.mxu3 %v906_v21  ;;  %v894_v30 = vor.u32 %v1063_v28, %v893_v27  ;;  %v901_v32 = vld [vmem:[#allocation5 + $0x140] sm:$0xf]  ;;  %v1064_v33 = vld [vmem:[#allocation5 + $0x148] sm:$0xf0]  ;;  %v898_v34 = vor.u32 %v1062_v29, %v895_v31  ;;  %v1059_v38 = vld [vmem:[#allocation5 + $0x124] sm:$0xf] }
  0x25   :  { %234 = vmatpush.bf16.msra.mxu0 %v762_v52  ;;  %v902_v35 = vor.u32 %v1064_v33, %v901_v32  ;;  %v881_v36 = vld [vmem:[#allocation5 + $0x120] sm:$0xf]  ;;  %v1060_v37 = vld [vmem:[#allocation5 + $0x128] sm:$0xf0]  ;;  %v883_v40 = vld [vmem:[#allocation5 + $0x12c] sm:$0xf0] }
  0x26   :  { %v882_v39 = vor.u32 %v1060_v37, %v881_v36  ;;  %v889_v41 = vld [vmem:[#allocation5 + $0x128] sm:$0xf]  ;;  %v1061_v42 = vld [vmem:[#allocation5 + $0x130] sm:$0xf0]  ;;  %v886_v43 = vor.u32 %v1059_v38, %v883_v40  ;;  %v1056_v47 = vld [vmem:[#allocation5 + $0x10c] sm:$0xf] }
  0x27   :  { %260 = vmatpush.bf16.msra.mxu2 %v770_v57  ;;  %247 = vmatpush.bf16.msra.mxu1 %v766_v60  ;;  %v890_v44 = vor.u32 %v1061_v42, %v889_v41  ;;  %v869_v45 = vld [vmem:[#allocation5 + $0x108] sm:$0xf]  ;;  %v1057_v46 = vld [vmem:[#allocation5 + $0x110] sm:$0xf0]  ;;  %v871_v49 = vld [vmem:[#allocation5 + $0x114] sm:$0xf0] }
  0x28   :  { %450 = vmatpush.bf16.msra.mxu3 %v894_v30  ;;  %v870_v48 = vor.u32 %v1057_v46, %v869_v45  ;;  %v877_v50 = vld [vmem:[#allocation5 + $0x110] sm:$0xf]  ;;  %v1058_v51 = vld [vmem:[#allocation5 + $0x118] sm:$0xf0]  ;;  %v874_v52 = vor.u32 %v1056_v47, %v871_v49  ;;  %v1053_v57 = vld [vmem:[#allocation5 + $0xf4] sm:$0xf] }
  0x29   :  { %235 = vmatpush.bf16.msra.mxu0 %v750_v61  ;;  %v878_v53 = vor.u32 %v1058_v51, %v877_v50  ;;  %v857_v54 = vld [vmem:[#allocation5 + $0xf0] sm:$0xf]  ;;  %v1054_v55 = vld [vmem:[#allocation5 + $0xf8] sm:$0xf0]  ;;  %v859_v58 = vld [vmem:[#allocation5 + $0xfc] sm:$0xf0] }
  0x2a   :  { %v858_v56 = vor.u32 %v1054_v55, %v857_v54  ;;  %v862_v59 = vor.u32 %v1053_v57, %v859_v58  ;;  %v865_v60 = vld [vmem:[#allocation5 + $0xf8] sm:$0xf]  ;;  %v1055_v61 = vld [vmem:[#allocation5 + $0x100] sm:$0xf0]  ;;  %v1050_v1 = vld [vmem:[#allocation5 + $0xdc] sm:$0xf] }
  0x2b   :  { %261 = vmatpush.bf16.msra.mxu2 %v758_v2  ;;  %248 = vmatpush.bf16.msra.mxu1 %v754_v7  ;;  %v866_v62 = vor.u32 %v1055_v61, %v865_v60  ;;  %v845_v63 = vld [vmem:[#allocation5 + $0xd8] sm:$0xf]  ;;  %v1051_v0 = vld [vmem:[#allocation5 + $0xe0] sm:$0xf0]  ;;  %v847_v3 = vld [vmem:[#allocation5 + $0xe4] sm:$0xf0] }
  0x2c   :  { %451 = vmatpush.bf16.msra.mxu3 %v882_v39  ;;  %v846_v2 = vor.u32 %v1051_v0, %v845_v63  ;;  %v853_v4 = vld [vmem:[#allocation5 + $0xe0] sm:$0xf]  ;;  %v1052_v5 = vld [vmem:[#allocation5 + $0xe8] sm:$0xf0]  ;;  %v850_v6 = vor.u32 %v1050_v1, %v847_v3  ;;  %v1047_v10 = vld [vmem:[#allocation5 + $0xc4] sm:$0xf] }
  0x2d   :  { %236 = vmatpush.bf16.msra.mxu0 %v738_v8  ;;  %v854_v7 = vor.u32 %v1052_v5, %v853_v4  ;;  %v833_v8 = vld [vmem:[#allocation5 + $0xc0] sm:$0xf]  ;;  %v1048_v9 = vld [vmem:[#allocation5 + $0xc8] sm:$0xf0]  ;;  %v841_v13 = vld [vmem:[#allocation5 + $0xc8] sm:$0xf] }
  0x2e   :  { %v1049_v14 = vld [vmem:[#allocation5 + $0xd0] sm:$0xf0]  ;;  %v1013_v40 = vld [vmem:[#allocation5 + $0x228] sm:$0xf]  ;;  %v1092_v42 = vld [vmem:[#allocation5 + $0x22c] sm:$0xf] }
  0x2f   :  { %262 = vmatpush.bf16.msra.mxu2 %v746_v11  ;;  %249 = vmatpush.bf16.msra.mxu1 %v742_v15  ;;  %v834_v11 = vor.u32 %v1048_v9, %v833_v8  ;;  %v1093_v41 = vld [vmem:[#allocation5 + $0x230] sm:$0xf0]  ;;  %v1021_v45 = vld [vmem:[#allocation5 + $0x230] sm:$0xf]  ;;  %v1094_v46 = vld [vmem:[#allocation5 + $0x238] sm:$0xf0] }
  0x30   :  { %237 = vmatmul.bf16.vlgmr.msra.gmra.mxu0 %v60_v16  ;;  %452 = vmatpush.bf16.msra.mxu3 %v870_v48  ;;  %v1022_v48 = vor.u32 %v1094_v46, %v1021_v45  ;;  %v1001_v49 = vld [vmem:[#allocation5 + $0x210] sm:$0xf]  ;;  %v1090_v50 = vld [vmem:[#allocation5 + $0x218] sm:$0xf0]  ;;  %v1089_v51 = vld [vmem:[#allocation5 + $0x214] sm:$0xf] }
  0x31   :  { %461 = vmatpush.bf16.msrb.mxu0 %v922_v12  ;;  %v835_v12 = vld [vmem:[#allocation5 + $0xcc] sm:$0xf0]  ;;  %v1009_v54 = vld [vmem:[#allocation5 + $0x218] sm:$0xf]  ;;  %v1091_v55 = vld [vmem:[#allocation5 + $0x220] sm:$0xf0] }
  0x32   :  { %263 = vmatmul.bf16.vlgmr.msra.gmra.mxu2 %v60_v16  ;;  %250 = vmatmul.bf16.vlgmr.msra.gmra.mxu1 %v60_v16  ;;  %v838_v15 = vor.u32 %v1047_v10, %v835_v12  ;;  %v842_v16 = vor.u32 %v1049_v14, %v841_v13  ;;  %v1010_v57 = vor.u32 %v1091_v55, %v1009_v54  ;;  %v989_v58 = vld [vmem:[#allocation5 + $0x1f8] sm:$0xf]  ;;  %v1086_v60 = vld [vmem:[#allocation5 + $0x1fc] sm:$0xf]  ;;  %v997_v63 = vld [vmem:[#allocation5 + $0x200] sm:$0xf] }
  0x33   :  { %474 = vmatpush.bf16.msrb.mxu1 %v926_v17  ;;  %v93_v17 = vld [vmem:[#allocation7] sm:$0x7]  ;;  %v1088_v0 = vld [vmem:[#allocation5 + $0x208] sm:$0xf0]  ;;  %v1083_v5 = vld [vmem:[#allocation5 + $0x1e4] sm:$0xf] }
  0x34   :  { %453 = vmatpush.bf16.msra.mxu3 %v858_v56  ;;  %v95_v18 = vperm.slane %v93_v17, 0  ;;  %v96_v24 = vperm.slane %v93_v17, 1  ;;  %v97_v28 = vperm.slane %v93_v17, 2  ;;  %v977_v3 = vld [vmem:[#allocation5 + $0x1e0] sm:$0xf]  ;;  %s1224_s0 = smov [#allocation8]  }
  0x35   :  { %462 = vmatpush.bf16.msrb.mxu0 %v910_v25  ;;  %v1084_v4 = vld [vmem:[#allocation5 + $0x1e8] sm:$0xf0]  ;;  %v985_v8 = vld [vmem:[#allocation5 + $0x1e8] sm:$0xf]  ;;  %v1085_v9 = vld [vmem:[#allocation5 + $0x1f0] sm:$0xf0] }
  0x36   :  { %v965_v12 = vld [vmem:[#allocation5 + $0x1c8] sm:$0xf]  ;;  %v1081_v13 = vld [vmem:[#allocation5 + $0x1d0] sm:$0xf0]  ;;  %v1080_v14 = vld [vmem:[#allocation5 + $0x1cc] sm:$0xf] }
  0x37   :  { %475 = vmatpush.bf16.msrb.mxu1 %v914_v26  ;;  %v973_v17 = vld [vmem:[#allocation5 + $0x1d0] sm:$0xf]  ;;  %s722_s2 = sshll.u32 %s1224_s0, 4  ;;  %s724_s5 = sshll.u32 %s1260_s3, 4  ;;  %s723_s2 = int_to_ptr.vmem [resolvable:$true] %s722_s2  ;;  %s725_s5 = int_to_ptr.hbm [resolvable:$true] %s724_s5 }
  0x38   :  { %454 = vmatpush.bf16.msra.mxu3 %v846_v2  ;;  %v998_v2 = vor.u32 %v1088_v0, %v997_v63 }
  0x39   :  { %463 = vmatpush.bf16.msrb.mxu0 %v898_v34 }
  0x3b   :  { %476 = vmatpush.bf16.msrb.mxu1 %v902_v35 }
  0x3c   :  { %455 = vmatpush.bf16.msra.mxu3 %v834_v11  ;;  %v986_v11 = vor.u32 %v1085_v9, %v985_v8  ;;  %v531_v8 = vld [vmem:[#allocation7 + $0x6] sm:$0x7] }
  0x3d   :  { %464 = vmatpush.bf16.msrb.mxu0 %v886_v43  ;;  %v1014_v43 = vor.u32 %v1093_v41, %v1013_v40  ;;  %v1072_v40 = vld [vmem:[#allocation5 + $0x188] sm:$0xf0]  ;;  %v1071_v41 = vld [vmem:[#allocation5 + $0x184] sm:$0xf]  ;;  %v533_v9 = vperm.slane %v531_v8, 0 }
  0x3f   :  { %477 = vmatpush.bf16.msrb.mxu1 %v890_v44  ;;  %v1015_v44 = vld [vmem:[#allocation5 + $0x234] sm:$0xf0]  ;;  %667 = vmatpush.bf16.msrb.mxu2 %v1014_v43  ;;  %v937_v43 = vld [vmem:[#allocation5 + $0x188] sm:$0xf] }
  0x40   :  { %v1018_v47 = vor.u32 %v1092_v42, %v1015_v44  ;;  %v931_v42 = vld [vmem:[#allocation5 + $0x18c] sm:$0xf0]  ;;  %v1073_v44 = vld [vmem:[#allocation5 + $0x190] sm:$0xf0] }
  0x41   :  { %465 = vmatpush.bf16.msrb.mxu0 %v874_v52  ;;  %v1002_v52 = vor.u32 %v1090_v50, %v1001_v49  ;;  %v934_v46 = vor.u32 %v1071_v41, %v931_v42  ;;  %v312_v50 = vld [vmem:[#allocation7 + $0x3] sm:$0x7] }
  0x42   :  { %680 = vmatpush.bf16.msrb.mxu3 %v1018_v47  ;;  %v938_v47 = vor.u32 %v1073_v44, %v937_v43  ;;  %v316_v63 = vperm.slane %v312_v50, 2 }
  0x43   :  { %478 = vmatpush.bf16.msrb.mxu1 %v878_v53  ;;  %v1003_v53 = vld [vmem:[#allocation5 + $0x21c] sm:$0xf0]  ;;  %668 = vmatpush.bf16.msrb.mxu2 %v1002_v52 }
  0x44   :  { %v1006_v56 = vor.u32 %v1089_v51, %v1003_v53  ;;  %v314_v51 = vperm.slane %v312_v50, 0 }
  0x45   :  { %466 = vmatpush.bf16.msrb.mxu0 %v862_v59  ;;  %v1087_v59 = vld [vmem:[#allocation5 + $0x200] sm:$0xf0] }
  0x46   :  { %681 = vmatpush.bf16.msrb.mxu3 %v1006_v56  ;;  %v990_v61 = vor.u32 %v1087_v59, %v989_v58  ;;  %v315_v59 = vperm.slane %v312_v50, 1 }
  0x47   :  { %479 = vmatpush.bf16.msrb.mxu1 %v866_v62  ;;  %v991_v62 = vld [vmem:[#allocation5 + $0x204] sm:$0xf0] }
  0x48   :  { %v994_v1 = vor.u32 %v1086_v60, %v991_v62  ;;  %669 = vmatpush.bf16.msrb.mxu2 %v990_v61 }
  0x49   :  { %467 = vmatpush.bf16.msrb.mxu0 %v850_v6  ;;  %v978_v6 = vor.u32 %v1084_v4, %v977_v3 }
  0x4a   :  { %682 = vmatpush.bf16.msrb.mxu3 %v994_v1 }
  0x4b   :  { %480 = vmatpush.bf16.msrb.mxu1 %v854_v7  ;;  %v979_v7 = vld [vmem:[#allocation5 + $0x1ec] sm:$0xf0] }
  0x4c   :  { %v982_v10 = vor.u32 %v1083_v5, %v979_v7  ;;  %670 = vmatpush.bf16.msrb.mxu2 %v978_v6 }
  0x4d   :  { %468 = vmatpush.bf16.msrb.mxu0 %v838_v15  ;;  %v966_v15 = vor.u32 %v1081_v13, %v965_v12 }
  0x4e   :  { %683 = vmatpush.bf16.msrb.mxu3 %v982_v10 }
  0x4f   :  { %481 = vmatpush.bf16.msrb.mxu1 %v842_v16  ;;  %v967_v16 = vld [vmem:[#allocation5 + $0x1d4] sm:$0xf0] }
  0x50   :  { %671 = vmatpush.bf16.msrb.mxu2 %v966_v15 }
  0x51   :  { %693 = vmatpush.bf16.msra.mxu0 %v1022_v48 }
  0x55   :  { %694 = vmatpush.bf16.msra.mxu0 %v1010_v57 }
  0x59   :  { %695 = vmatpush.bf16.msra.mxu0 %v998_v2 }
  0x5d   :  { %696 = vmatpush.bf16.msra.mxu0 %v986_v11 }
  0xad   :  { %v238_v19 = vpop.f32.mrf.mxu0 }
  0xae   :  { %v239_v20 = vadd.f32 %v238_v19, %v95_v18  ;;  %v1082_v18 = vld [vmem:[#allocation5 + $0x1d8] sm:$0xf0]  ;;  %v970_v19 = vor.u32 %v1080_v14, %v967_v16 }
  0xaf   :  { %v251_v22 = vpop.f32.mrf.mxu1 }
  0xb0   :  { %v269_v21 = vsub.f32 0.0, %v239_v20  ;;  %v252_v27 = vadd.f32 %v251_v22, %v96_v24  ;;  %v974_v20 = vor.u32 %v1082_v18, %v973_v17  ;;  %684 = vmatpush.bf16.msrb.mxu3 %v970_v19  ;;  %v1078_v22 = vld [vmem:[#allocation5 + $0x1b8] sm:$0xf0]  ;;  %v534_v18 = vperm.slane %v531_v8, 1 }
  0xb2   :  { %v270_v23 = vmul.f32 1.442695, %v269_v21  ;;  %v268_v32 = vmax.f32 %v252_v27, 0.0  ;;  %697 = vmatpush.bf16.msra.mxu0 %v974_v20  ;;  %v953_v21 = vld [vmem:[#allocation5 + $0x1b0] sm:$0xf] }
  0xb3   :  { %v954_v24 = vor.u32 %v1078_v22, %v953_v21  ;;  %v1079_v27 = vld [vmem:[#allocation5 + $0x1c0] sm:$0xf0]  ;;  %v535_v22 = vperm.slane %v531_v8, 2 }
  0xb4   :  { %1103 = vpow2.f32 %v270_v23  ;;  %v1077_v23 = vld [vmem:[#allocation5 + $0x1b4] sm:$0xf] }
  0xb5   :  { %v264_v25 = vpop.f32.mrf.mxu2  ;;  %v240_v26 = vpop.f32.mrf.mxu0  ;;  %672 = vmatpush.bf16.msrb.mxu2 %v954_v24 }
  0xb6   :  { %v265_v33 = vadd.f32 %v264_v25, %v97_v28  ;;  %v955_v25 = vld [vmem:[#allocation5 + $0x1bc] sm:$0xf0]  ;;  %v961_v26 = vld [vmem:[#allocation5 + $0x1b8] sm:$0xf] }
  0xb7   :  { %v253_v29 = vpop.f32.mrf.mxu1  ;;  %v958_v28 = vor.u32 %v1077_v23, %v955_v25 }
  0xb8   :  { %v274_v35 = vsub.f32 %v268_v32, %v265_v33  ;;  %v962_v29 = vor.u32 %v1079_v27, %v961_v26  ;;  %v1074_v32 = vld [vmem:[#allocation5 + $0x19c] sm:$0xf] }
  0xb9   :  { %685 = vmatpush.bf16.msrb.mxu3 %v958_v28 }
  0xba   :  { %v1104_v30 = vpop.eup %1103  ;;  %698 = vmatpush.bf16.msra.mxu0 %v962_v29 }
  0xbb   :  { %v272_v31 = vadd.f32 1.0, %v1104_v30  ;;  %v941_v30 = vld [vmem:[#allocation5 + $0x198] sm:$0xf] }
  0xbd   :  { %v266_v34 = vpop.f32.mrf.mxu2  ;;  %1105 = vrcp.f32 %v272_v31  ;;  %v1075_v31 = vld [vmem:[#allocation5 + $0x1a0] sm:$0xf0] }
  0xbe   :  { %v943_v34 = vld [vmem:[#allocation5 + $0x1a4] sm:$0xf0] }
  0xc3   :  { %v1106_v36 = vpop.eup %1105 }
  0xc4   :  { %v275_v37 = vmul.f32 %v1106_v36, %v274_v35  ;;  %v949_v35 = vld [vmem:[#allocation5 + $0x1a0] sm:$0xf]  ;;  %v1076_v36 = vld [vmem:[#allocation5 + $0x1a8] sm:$0xf0] }
  0xc6   :  { %v276_v38 = vadd.f32 %v275_v37, %v265_v33  ;;  %v942_v33 = vor.u32 %v1075_v31, %v941_v30  ;;  %v946_v37 = vor.u32 %v1074_v32, %v943_v34 }
  0xc8   :  { %v277_v39 = vpack.c.bf16 %v276_v38, %v276_v38  ;;  %v950_v38 = vor.u32 %v1076_v36, %v949_v35  ;;  %673 = vmatpush.bf16.msrb.mxu2 %v942_v33  ;;  %686 = vmatpush.bf16.msrb.mxu3 %v946_v37 }
  0xca   :  { %456 = vmatmul.bf16.vlgmr.msra.gmra.mxu3 %v277_v39  ;;  %469 = vmatmul.bf16.vlgmr.msrb.gmra.mxu0 %v277_v39 }
  0xcb   :  { %482 = vmatmul.bf16.vlgmr.msrb.gmra.mxu1 %v277_v39  ;;  %v929_v39 = vld [vmem:[#allocation5 + $0x180] sm:$0xf]  ;;  %699 = vmatpush.bf16.msra.mxu0 %v950_v38 }
  0xcc   :  { %v930_v45 = vor.u32 %v1072_v40, %v929_v39  ;;  %687 = vmatpush.bf16.msrb.mxu3 %v934_v46 }
  0xce   :  { %674 = vmatpush.bf16.msrb.mxu2 %v930_v45 }
  0xcf   :  { %700 = vmatpush.bf16.msra.mxu0 %v938_v47 }
 0x147   :  { %v470_v48 = vpop.f32.mrf.mxu0 }
 0x148   :  { %v483_v49 = vpop.f32.mrf.mxu1  ;;  %v471_v61 = vadd.f32 %v470_v48, %v315_v59 }
 0x149   :  { %v484_v1 = vadd.f32 %v483_v49, %v316_v63 }
 0x14a   :  { %v487_v0 = vmax.f32 %v471_v61, 0.0 }
 0x14c   :  { %v493_v2 = vsub.f32 %v487_v0, %v484_v1 }
 0x14d   :  { %v457_v52 = vpop.f32.mrf.mxu3 }
 0x14e   :  { %v458_v53 = vadd.f32 %v457_v52, %v314_v51 }
 0x14f   :  { %v472_v54 = vpop.f32.mrf.mxu0 }
 0x150   :  { %v488_v55 = vsub.f32 0.0, %v458_v53  ;;  %v485_v56 = vpop.f32.mrf.mxu1 }
 0x152   :  { %v489_v57 = vmul.f32 1.442695, %v488_v55 }
 0x154   :  { %1107 = vpow2.f32 %v489_v57 }
 0x155   :  { %v459_v58 = vpop.f32.mrf.mxu3 }
 0x15a   :  { %v1108_v60 = vpop.eup %1107 }
 0x15b   :  { %v491_v62 = vadd.f32 1.0, %v1108_v60 }
 0x15d   :  { %1109 = vrcp.f32 %v491_v62 }
 0x163   :  { %v1110_v3 = vpop.eup %1109 }
 0x164   :  { %v494_v4 = vmul.f32 %v1110_v3, %v493_v2 }
 0x166   :  { %v495_v5 = vadd.f32 %v494_v4, %v484_v1 }
 0x168   :  { %v496_v6 = vpack.c.bf16 %v495_v5, %v495_v5 }
 0x16a   :  { %675 = vmatmul.bf16.vlgmr.msrb.gmra.mxu2 %v496_v6  ;;  %688 = vmatmul.bf16.vlgmr.msrb.gmra.mxu3 %v496_v6 }
 0x16b   :  { %701 = vmatmul.bf16.vlgmr.msra.gmra.mxu0 %v496_v6 }
 0x1e8   :  { %v702_v7 = vpop.f32.mrf.mxu0 }
 0x1e9   :  { %v703_v24 = vadd.f32 %v702_v7, %v535_v22 }
 0x1ed   :  { %v676_v10 = vpop.f32.mrf.mxu2  ;;  %v689_v11 = vpop.f32.mrf.mxu3 }
 0x1ee   :  { %v677_v12 = vadd.f32 %v676_v10, %v533_v9  ;;  %v690_v20 = vadd.f32 %v689_v11, %v534_v18 }
 0x1f0   :  { %v707_v13 = vsub.f32 0.0, %v677_v12  ;;  %v704_v14 = vpop.f32.mrf.mxu0  ;;  %v706_v23 = vmax.f32 %v690_v20, 0.0 }
 0x1f2   :  { %v708_v15 = vmul.f32 1.442695, %v707_v13  ;;  %v712_v25 = vsub.f32 %v706_v23, %v703_v24 }
 0x1f4   :  { %1111 = vpow2.f32 %v708_v15 }
 0x1f5   :  { %v678_v16 = vpop.f32.mrf.mxu2  ;;  %v691_v17 = vpop.f32.mrf.mxu3 }
 0x1fa   :  { %v1112_v19 = vpop.eup %1111 }
 0x1fb   :  { %v710_v21 = vadd.f32 1.0, %v1112_v19 }
 0x1fd   :  { %1113 = vrcp.f32 %v710_v21 }
 0x203   :  { %v1114_v26 = vpop.eup %1113 }
 0x204   :  { %v713_v27 = vmul.f32 %v1114_v26, %v712_v25 }
 0x206   :  { %v714_v28 = vadd.f32 %v713_v27, %v703_v24 }
 0x208   :  { %v715_v29 = vpack.c.bf16 %v714_v28, %v714_v28 }
 0x20a   :  { %716 = vst [vmem:[#allocation8] sm:$0xf] %v715_v29 }
 0x20b   :  { %727 = dma.vmem_to_hbm [thread:$0]  %s723_s2, 64, %s725_s5, [#allocation4]  }
 0x20c   :  { %1215 = dma.done.wait [#allocation4], 64  }
 0x20d   :  { %1216 = vsyncadd [#allocation4], 4294967232 }
 0x20e   :  { %732 = vsyncpa [#allocation3], 1 }
 0x20f   :  { %733 = vsyncpa [#allocation6], 1 }
 0x210   :  { %734 = vsyncpa [#allocation4], 1 }

// kernel: tpu_custom_call.1
= control target key start
LH: loop header
LB: loop body
LE: loop exit
PB: predicated region body
PF: predicated region fallthrough
CT: control target
= control target key end

     0   :  { %8 = vsyncpa [#allocation3], 0  ;;  %s1257_s0 = inlined_call_operand.hbm [shape: bf16[8,128], index: 0, kind: input, shape index: {}]   ;;  %s1258_s1 = inlined_call_operand.hbm [shape: bf16[3,128,384], index: 1, kind: input, shape index: {}]   ;;  %s1259_s2 = inlined_call_operand.hbm [shape: f32[3,1,384], index: 2, kind: input, shape index: {}]   ;;  %s1260_s3 = inlined_call_operand.hbm [shape: bf16[8,128], index: 3, kind: output, shape index: {}]  }
   0x1   :  { %9 = vsyncpa [#allocation6], 0  ;;  %s26_s14 = sshll.u32 %s1258_s1, 4  ;;  %s27_s14 = int_to_ptr.hbm [resolvable:$true] %s26_s14 }
   0x2   :  { %10 = vsyncpa [#allocation4], 0  ;;  %s1217_s15 = smov [#allocation5]   ;;  %s16_s19 = sshll.u32 %s1257_s0, 4  ;;  %s17_s19 = int_to_ptr.hbm [resolvable:$true] %s16_s19 }
   0x3   :  { %s28_s16 = sshll.u32 %s1217_s15, 4  ;;  %s1218_s20 = smov 192   ;;  %s29_s16 = int_to_ptr.vmem [resolvable:$true] %s28_s16 }
   0x4   :  { %s1219_s21 = smov 12   ;;  %s1220_s22 = smov [#allocation2]  }
   0x5   :  { %34 = dma.hbm_to_vmem [thread:$0]  %s27_s14, 9216, %s29_s16, [#allocation6], %s1218_s20, %s1218_s20, %s1219_s21  }
   0x6   :  { %s18_s23 = sshll.u32 %s1220_s22, 4  ;;  %s39_s26 = sshll.u32 %s1259_s2, 4  ;;  %s19_s23 = int_to_ptr.vmem [resolvable:$true] %s18_s23  ;;  %s40_s26 = int_to_ptr.hbm [resolvable:$true] %s39_s26 }
   0x7   :  { %21 = dma.hbm_to_vmem [thread:$0]  %s17_s19, 64, %s19_s23, [#allocation3]  }
   0x8   :  { %s1221_s1 = smov [#allocation7]   ;;  %s1222_s28 = smov 48  }
   0x9   :  { %s41_s27 = sshll.u32 %s1221_s1, 4  ;;  %s1223_s29 = smov 3   ;;  %s42_s27 = int_to_ptr.vmem [resolvable:$true] %s41_s27 }
   0xa   :  { %47 = dma.hbm_to_vmem [thread:$0]  %s40_s26, 144, %s42_s27, [#allocation6], %s1222_s28, %s1222_s28, %s1223_s29  }
   0xb   :  { %1211 = dma.done.wait [#allocation3], 64  }
   0xc   :  { %1212 = vsyncadd [#allocation3], 4294967232 }
   0xd   :  { %1213 = dma.done.wait [#allocation6], 9360  }
   0xe   :  { %1214 = vsyncadd [#allocation6], 4294957936  ;;  %v821_v0 = vld [vmem:[#allocation5 + $0xa8] sm:$0xf]  ;;  %v1045_v1 = vld [vmem:[#allocation5 + $0xb0] sm:$0xf0] }
   0xf   :  { %v809_v2 = vld [vmem:[#allocation5 + $0x90] sm:$0xf]  ;;  %v822_v3 = vor.u32 %v1045_v1, %v821_v0  ;;  %v1042_v4 = vld [vmem:[#allocation5 + $0x98] sm:$0xf0]  ;;  %v1044_v8 = vld [vmem:[#allocation5 + $0xac] sm:$0xf] }
  0x10   :  { %v829_v5 = vld [vmem:[#allocation5 + $0xb0] sm:$0xf]  ;;  %v1046_v6 = vld [vmem:[#allocation5 + $0xb8] sm:$0xf0]  ;;  %v810_v9 = vor.u32 %v1042_v4, %v809_v2  ;;  %v823_v10 = vld [vmem:[#allocation5 + $0xb4] sm:$0xf0] }
  0x11   :  { %v830_v7 = vor.u32 %v1046_v6, %v829_v5  ;;  %229 = vmatpush.bf16.msra.mxu0 %v822_v3  ;;  %v817_v11 = vld [vmem:[#allocation5 + $0x98] sm:$0xf]  ;;  %v1043_v12 = vld [vmem:[#allocation5 + $0xa0] sm:$0xf0]  ;;  %v826_v15 = vor.u32 %v1044_v8, %v823_v10  ;;  %v1041_v17 = vld [vmem:[#allocation5 + $0x94] sm:$0xf] }
  0x12   :  { %v797_v13 = vld [vmem:[#allocation5 + $0x78] sm:$0xf]  ;;  %v1039_v14 = vld [vmem:[#allocation5 + $0x80] sm:$0xf0]  ;;  %v818_v16 = vor.u32 %v1043_v12, %v817_v11  ;;  %v811_v18 = vld [vmem:[#allocation5 + $0x9c] sm:$0xf0] }
  0x13   :  { %255 = vmatpush.bf16.msra.mxu2 %v830_v7  ;;  %v805_v19 = vld [vmem:[#allocation5 + $0x80] sm:$0xf]  ;;  %v1040_v20 = vld [vmem:[#allocation5 + $0x88] sm:$0xf0]  ;;  %242 = vmatpush.bf16.msra.mxu1 %v826_v15  ;;  %v814_v21 = vor.u32 %v1041_v17, %v811_v18  ;;  %v798_v22 = vor.u32 %v1039_v14, %v797_v13  ;;  %v1038_v23 = vld [vmem:[#allocation5 + $0x7c] sm:$0xf] }
  0x14   :  { %v799_v24 = vld [vmem:[#allocation5 + $0x84] sm:$0xf0]  ;;  %v785_v25 = vld [vmem:[#allocation5 + $0x60] sm:$0xf]  ;;  %v1036_v26 = vld [vmem:[#allocation5 + $0x68] sm:$0xf0]  ;;  %v806_v27 = vor.u32 %v1040_v20, %v805_v19 }
  0x15   :  { %230 = vmatpush.bf16.msra.mxu0 %v810_v9  ;;  %v793_v28 = vld [vmem:[#allocation5 + $0x68] sm:$0xf]  ;;  %v1037_v29 = vld [vmem:[#allocation5 + $0x70] sm:$0xf0]  ;;  %v802_v30 = vor.u32 %v1038_v23, %v799_v24  ;;  %v786_v31 = vor.u32 %v1036_v26, %v785_v25  ;;  %v1035_v32 = vld [vmem:[#allocation5 + $0x64] sm:$0xf] }
  0x16   :  { %v787_v33 = vld [vmem:[#allocation5 + $0x6c] sm:$0xf0]  ;;  %v773_v34 = vld [vmem:[#allocation5 + $0x48] sm:$0xf]  ;;  %v1033_v35 = vld [vmem:[#allocation5 + $0x50] sm:$0xf0]  ;;  %v794_v36 = vor.u32 %v1037_v29, %v793_v28 }
  0x17   :  { %256 = vmatpush.bf16.msra.mxu2 %v818_v16  ;;  %243 = vmatpush.bf16.msra.mxu1 %v814_v21  ;;  %v781_v37 = vld [vmem:[#allocation5 + $0x50] sm:$0xf]  ;;  %v1034_v38 = vld [vmem:[#allocation5 + $0x58] sm:$0xf0]  ;;  %v790_v39 = vor.u32 %v1035_v32, %v787_v33  ;;  %v774_v40 = vor.u32 %v1033_v35, %v773_v34  ;;  %v1032_v42 = vld [vmem:[#allocation5 + $0x4c] sm:$0xf] }
  0x18   :  { %v761_v41 = vld [vmem:[#allocation5 + $0x30] sm:$0xf]  ;;  %v775_v43 = vld [vmem:[#allocation5 + $0x54] sm:$0xf0]  ;;  %v1030_v44 = vld [vmem:[#allocation5 + $0x38] sm:$0xf0]  ;;  %v782_v45 = vor.u32 %v1034_v38, %v781_v37 }
  0x19   :  { %231 = vmatpush.bf16.msra.mxu0 %v798_v22  ;;  %v917_v46 = vld [vmem:[#allocation5 + $0x168] sm:$0xf]  ;;  %v1069_v47 = vld [vmem:[#allocation5 + $0x170] sm:$0xf0]  ;;  %v769_v48 = vld [vmem:[#allocation5 + $0x38] sm:$0xf]  ;;  %v778_v51 = vor.u32 %v1032_v42, %v775_v43  ;;  %v762_v52 = vor.u32 %v1030_v44, %v761_v41 }
  0x1a   :  { %v1031_v49 = vld [vmem:[#allocation5 + $0x40] sm:$0xf0]  ;;  %v918_v50 = vor.u32 %v1069_v47, %v917_v46  ;;  %v1029_v53 = vld [vmem:[#allocation5 + $0x34] sm:$0xf]  ;;  %v763_v54 = vld [vmem:[#allocation5 + $0x3c] sm:$0xf0] }
  0x1b   :  { %257 = vmatpush.bf16.msra.mxu2 %v806_v27  ;;  %244 = vmatpush.bf16.msra.mxu1 %v802_v30  ;;  %v749_v55 = vld [vmem:[#allocation5 + $0x18] sm:$0xf]  ;;  %v1027_v56 = vld [vmem:[#allocation5 + $0x20] sm:$0xf0]  ;;  %v770_v57 = vor.u32 %v1031_v49, %v769_v48  ;;  %v757_v58 = vld [vmem:[#allocation5 + $0x20] sm:$0xf]  ;;  %v766_v60 = vor.u32 %v1029_v53, %v763_v54 }
  0x1c   :  { %448 = vmatpush.bf16.msra.mxu3 %v918_v50  ;;  %v1028_v59 = vld [vmem:[#allocation5 + $0x28] sm:$0xf0]  ;;  %v750_v61 = vor.u32 %v1027_v56, %v749_v55  ;;  %v1026_v62 = vld [vmem:[#allocation5 + $0x1c] sm:$0xf]  ;;  %v751_v63 = vld [vmem:[#allocation5 + $0x24] sm:$0xf0] }
  0x1d   :  { %232 = vmatpush.bf16.msra.mxu0 %v786_v31  ;;  %v737_v0 = vld [vmem:[#allocation5] sm:$0xf]  ;;  %v1024_v1 = vld [vmem:[#allocation5 + $0x8] sm:$0xf0]  ;;  %v758_v2 = vor.u32 %v1028_v59, %v757_v58  ;;  %v745_v3 = vld [vmem:[#allocation5 + $0x8] sm:$0xf]  ;;  %v754_v7 = vor.u32 %v1026_v62, %v751_v63 }
  0x1e   :  { %v1025_v4 = vld [vmem:[#allocation5 + $0x10] sm:$0xf0]  ;;  %v1068_v5 = vld [vmem:[#allocation5 + $0x16c] sm:$0xf]  ;;  %v919_v6 = vld [vmem:[#allocation5 + $0x174] sm:$0xf0]  ;;  %v738_v8 = vor.u32 %v1024_v1, %v737_v0 }
  0x1f   :  { %258 = vmatpush.bf16.msra.mxu2 %v794_v36  ;;  %245 = vmatpush.bf16.msra.mxu1 %v790_v39  ;;  %v1023_v9 = vld [vmem:[#allocation5 + $0x4] sm:$0xf]  ;;  %v739_v10 = vld [vmem:[#allocation5 + $0xc] sm:$0xf0]  ;;  %v746_v11 = vor.u32 %v1025_v4, %v745_v3  ;;  %v922_v12 = vor.u32 %v1068_v5, %v919_v6  ;;  %v1070_v14 = vld [vmem:[#allocation5 + $0x178] sm:$0xf0] }
  0x20   :  { %v925_v13 = vld [vmem:[#allocation5 + $0x170] sm:$0xf]  ;;  %v742_v15 = vor.u32 %v1023_v9, %v739_v10  ;;  %v60_v16 = vld [vmem:[#allocation2] sm:$0xf]  ;;  %v1065_v20 = vld [vmem:[#allocation5 + $0x154] sm:$0xf] }
  0x21   :  { %233 = vmatpush.bf16.msra.mxu0 %v774_v40  ;;  %v926_v17 = vor.u32 %v1070_v14, %v925_v13  ;;  %v905_v18 = vld [vmem:[#allocation5 + $0x150] sm:$0xf]  ;;  %v1066_v19 = vld [vmem:[#allocation5 + $0x158] sm:$0xf0]  ;;  %v907_v22 = vld [vmem:[#allocation5 + $0x15c] sm:$0xf0] }
  0x22   :  { %v906_v21 = vor.u32 %v1066_v19, %v905_v18  ;;  %v913_v23 = vld [vmem:[#allocation5 + $0x158] sm:$0xf]  ;;  %v1067_v24 = vld [vmem:[#allocation5 + $0x160] sm:$0xf0]  ;;  %v910_v25 = vor.u32 %v1065_v20, %v907_v22  ;;  %v1062_v29 = vld [vmem:[#allocation5 + $0x13c] sm:$0xf] }
  0x23   :  { %259 = vmatpush.bf16.msra.mxu2 %v782_v45  ;;  %246 = vmatpush.bf16.msra.mxu1 %v778_v51  ;;  %v914_v26 = vor.u32 %v1067_v24, %v913_v23  ;;  %v893_v27 = vld [vmem:[#allocation5 + $0x138] sm:$0xf]  ;;  %v1063_v28 = vld [vmem:[#allocation5 + $0x140] sm:$0xf0]  ;;  %v895_v31 = vld [vmem:[#allocation5 + $0x144] sm:$0xf0] }
  0x24   :  { %449 = vmatpush.bf16.msra.mxu3 %v906_v21  ;;  %v894_v30 = vor.u32 %v1063_v28, %v893_v27  ;;  %v901_v32 = vld [vmem:[#allocation5 + $0x140] sm:$0xf]  ;;  %v1064_v33 = vld [vmem:[#allocation5 + $0x148] sm:$0xf0]  ;;  %v898_v34 = vor.u32 %v1062_v29, %v895_v31  ;;  %v1059_v38 = vld [vmem:[#allocation5 + $0x124] sm:$0xf] }
  0x25   :  { %234 = vmatpush.bf16.msra.mxu0 %v762_v52  ;;  %v902_v35 = vor.u32 %v1064_v33, %v901_v32  ;;  %v881_v36 = vld [vmem:[#allocation5 + $0x120] sm:$0xf]  ;;  %v1060_v37 = vld [vmem:[#allocation5 + $0x128] sm:$0xf0]  ;;  %v883_v40 = vld [vmem:[#allocation5 + $0x12c] sm:$0xf0] }
  0x26   :  { %v882_v39 = vor.u32 %v1060_v37, %v881_v36  ;;  %v889_v41 = vld [vmem:[#allocation5 + $0x128] sm:$0xf]  ;;  %v1061_v42 = vld [vmem:[#allocation5 + $0x130] sm:$0xf0]  ;;  %v886_v43 = vor.u32 %v1059_v38, %v883_v40  ;;  %v1056_v47 = vld [vmem:[#allocation5 + $0x10c] sm:$0xf] }
  0x27   :  { %260 = vmatpush.bf16.msra.mxu2 %v770_v57  ;;  %247 = vmatpush.bf16.msra.mxu1 %v766_v60  ;;  %v890_v44 = vor.u32 %v1061_v42, %v889_v41  ;;  %v869_v45 = vld [vmem:[#allocation5 + $0x108] sm:$0xf]  ;;  %v1057_v46 = vld [vmem:[#allocation5 + $0x110] sm:$0xf0]  ;;  %v871_v49 = vld [vmem:[#allocation5 + $0x114] sm:$0xf0] }
  0x28   :  { %450 = vmatpush.bf16.msra.mxu3 %v894_v30  ;;  %v870_v48 = vor.u32 %v1057_v46, %v869_v45  ;;  %v877_v50 = vld [vmem:[#allocation5 + $0x110] sm:$0xf]  ;;  %v1058_v51 = vld [vmem:[#allocation5 + $0x118] sm:$0xf0]  ;;  %v874_v52 = vor.u32 %v1056_v47, %v871_v49  ;;  %v1053_v57 = vld [vmem:[#allocation5 + $0xf4] sm:$0xf] }
  0x29   :  { %235 = vmatpush.bf16.msra.mxu0 %v750_v61  ;;  %v878_v53 = vor.u32 %v1058_v51, %v877_v50  ;;  %v857_v54 = vld [vmem:[#allocation5 + $0xf0] sm:$0xf]  ;;  %v1054_v55 = vld [vmem:[#allocation5 + $0xf8] sm:$0xf0]  ;;  %v859_v58 = vld [vmem:[#allocation5 + $0xfc] sm:$0xf0] }
  0x2a   :  { %v858_v56 = vor.u32 %v1054_v55, %v857_v54  ;;  %v862_v59 = vor.u32 %v1053_v57, %v859_v58  ;;  %v865_v60 = vld [vmem:[#allocation5 + $0xf8] sm:$0xf]  ;;  %v1055_v61 = vld [vmem:[#allocation5 + $0x100] sm:$0xf0]  ;;  %v1050_v1 = vld [vmem:[#allocation5 + $0xdc] sm:$0xf] }
  0x2b   :  { %261 = vmatpush.bf16.msra.mxu2 %v758_v2  ;;  %248 = vmatpush.bf16.msra.mxu1 %v754_v7  ;;  %v866_v62 = vor.u32 %v1055_v61, %v865_v60  ;;  %v845_v63 = vld [vmem:[#allocation5 + $0xd8] sm:$0xf]  ;;  %v1051_v0 = vld [vmem:[#allocation5 + $0xe0] sm:$0xf0]  ;;  %v847_v3 = vld [vmem:[#allocation5 + $0xe4] sm:$0xf0] }
  0x2c   :  { %451 = vmatpush.bf16.msra.mxu3 %v882_v39  ;;  %v846_v2 = vor.u32 %v1051_v0, %v845_v63  ;;  %v853_v4 = vld [vmem:[#allocation5 + $0xe0] sm:$0xf]  ;;  %v1052_v5 = vld [vmem:[#allocation5 + $0xe8] sm:$0xf0]  ;;  %v850_v6 = vor.u32 %v1050_v1, %v847_v3  ;;  %v1047_v10 = vld [vmem:[#allocation5 + $0xc4] sm:$0xf] }
  0x2d   :  { %236 = vmatpush.bf16.msra.mxu0 %v738_v8  ;;  %v854_v7 = vor.u32 %v1052_v5, %v853_v4  ;;  %v833_v8 = vld [vmem:[#allocation5 + $0xc0] sm:$0xf]  ;;  %v1048_v9 = vld [vmem:[#allocation5 + $0xc8] sm:$0xf0]  ;;  %v841_v13 = vld [vmem:[#allocation5 + $0xc8] sm:$0xf] }
  0x2e   :  { %v1049_v14 = vld [vmem:[#allocation5 + $0xd0] sm:$0xf0]  ;;  %v1013_v40 = vld [vmem:[#allocation5 + $0x228] sm:$0xf]  ;;  %v1092_v42 = vld [vmem:[#allocation5 + $0x22c] sm:$0xf] }
  0x2f   :  { %262 = vmatpush.bf16.msra.mxu2 %v746_v11  ;;  %249 = vmatpush.bf16.msra.mxu1 %v742_v15  ;;  %v834_v11 = vor.u32 %v1048_v9, %v833_v8  ;;  %v1093_v41 = vld [vmem:[#allocation5 + $0x230] sm:$0xf0]  ;;  %v1021_v45 = vld [vmem:[#allocation5 + $0x230] sm:$0xf]  ;;  %v1094_v46 = vld [vmem:[#allocation5 + $0x238] sm:$0xf0] }
  0x30   :  { %237 = vmatmul.bf16.vlgmr.msra.gmra.mxu0 %v60_v16  ;;  %452 = vmatpush.bf16.msra.mxu3 %v870_v48  ;;  %v1022_v48 = vor.u32 %v1094_v46, %v1021_v45  ;;  %v1001_v49 = vld [vmem:[#allocation5 + $0x210] sm:$0xf]  ;;  %v1090_v50 = vld [vmem:[#allocation5 + $0x218] sm:$0xf0]  ;;  %v1089_v51 = vld [vmem:[#allocation5 + $0x214] sm:$0xf] }
  0x31   :  { %461 = vmatpush.bf16.msrb.mxu0 %v922_v12  ;;  %v835_v12 = vld [vmem:[#allocation5 + $0xcc] sm:$0xf0]  ;;  %v1009_v54 = vld [vmem:[#allocation5 + $0x218] sm:$0xf]  ;;  %v1091_v55 = vld [vmem:[#allocation5 + $0x220] sm:$0xf0] }
  0x32   :  { %263 = vmatmul.bf16.vlgmr.msra.gmra.mxu2 %v60_v16  ;;  %250 = vmatmul.bf16.vlgmr.msra.gmra.mxu1 %v60_v16  ;;  %v838_v15 = vor.u32 %v1047_v10, %v835_v12  ;;  %v842_v16 = vor.u32 %v1049_v14, %v841_v13  ;;  %v1010_v57 = vor.u32 %v1091_v55, %v1009_v54  ;;  %v989_v58 = vld [vmem:[#allocation5 + $0x1f8] sm:$0xf]  ;;  %v1086_v60 = vld [vmem:[#allocation5 + $0x1fc] sm:$0xf]  ;;  %v997_v63 = vld [vmem:[#allocation5 + $0x200] sm:$0xf] }
  0x33   :  { %474 = vmatpush.bf16.msrb.mxu1 %v926_v17  ;;  %v93_v17 = vld [vmem:[#allocation7] sm:$0x7]  ;;  %v1088_v0 = vld [vmem:[#allocation5 + $0x208] sm:$0xf0]  ;;  %v1083_v5 = vld [vmem:[#allocation5 + $0x1e4] sm:$0xf] }
  0x34   :  { %453 = vmatpush.bf16.msra.mxu3 %v858_v56  ;;  %v95_v18 = vperm.slane %v93_v17, 0  ;;  %v96_v24 = vperm.slane %v93_v17, 1  ;;  %v97_v28 = vperm.slane %v93_v17, 2  ;;  %v977_v3 = vld [vmem:[#allocation5 + $0x1e0] sm:$0xf]  ;;  %s1224_s0 = smov [#allocation8]  }
  0x35   :  { %462 = vmatpush.bf16.msrb.mxu0 %v910_v25  ;;  %v1084_v4 = vld [vmem:[#allocation5 + $0x1e8] sm:$0xf0]  ;;  %v985_v8 = vld [vmem:[#allocation5 + $0x1e8] sm:$0xf]  ;;  %v1085_v9 = vld [vmem:[#allocation5 + $0x1f0] sm:$0xf0] }
  0x36   :  { %v965_v12 = vld [vmem:[#allocation5 + $0x1c8] sm:$0xf]  ;;  %v1081_v13 = vld [vmem:[#allocation5 + $0x1d0] sm:$0xf0]  ;;  %v1080_v14 = vld [vmem:[#allocation5 + $0x1cc] sm:$0xf] }
  0x37   :  { %475 = vmatpush.bf16.msrb.mxu1 %v914_v26  ;;  %v973_v17 = vld [vmem:[#allocation5 + $0x1d0] sm:$0xf]  ;;  %s722_s2 = sshll.u32 %s1224_s0, 4  ;;  %s724_s5 = sshll.u32 %s1260_s3, 4  ;;  %s723_s2 = int_to_ptr.vmem [resolvable:$true] %s722_s2  ;;  %s725_s5 = int_to_ptr.hbm [resolvable:$true] %s724_s5 }
  0x38   :  { %454 = vmatpush.bf16.msra.mxu3 %v846_v2  ;;  %v998_v2 = vor.u32 %v1088_v0, %v997_v63 }
  0x39   :  { %463 = vmatpush.bf16.msrb.mxu0 %v898_v34 }
  0x3b   :  { %476 = vmatpush.bf16.msrb.mxu1 %v902_v35 }
  0x3c   :  { %455 = vmatpush.bf16.msra.mxu3 %v834_v11  ;;  %v986_v11 = vor.u32 %v1085_v9, %v985_v8  ;;  %v531_v8 = vld [vmem:[#allocation7 + $0x6] sm:$0x7] }
  0x3d   :  { %464 = vmatpush.bf16.msrb.mxu0 %v886_v43  ;;  %v1014_v43 = vor.u32 %v1093_v41, %v1013_v40  ;;  %v1072_v40 = vld [vmem:[#allocation5 + $0x188] sm:$0xf0]  ;;  %v1071_v41 = vld [vmem:[#allocation5 + $0x184] sm:$0xf]  ;;  %v533_v9 = vperm.slane %v531_v8, 0 }
  0x3f   :  { %477 = vmatpush.bf16.msrb.mxu1 %v890_v44  ;;  %v1015_v44 = vld [vmem:[#allocation5 + $0x234] sm:$0xf0]  ;;  %667 = vmatpush.bf16.msrb.mxu2 %v1014_v43  ;;  %v937_v43 = vld [vmem:[#allocation5 + $0x188] sm:$0xf] }
  0x40   :  { %v1018_v47 = vor.u32 %v1092_v42, %v1015_v44  ;;  %v931_v42 = vld [vmem:[#allocation5 + $0x18c] sm:$0xf0]  ;;  %v1073_v44 = vld [vmem:[#allocation5 + $0x190] sm:$0xf0] }
  0x41   :  { %465 = vmatpush.bf16.msrb.mxu0 %v874_v52  ;;  %v1002_v52 = vor.u32 %v1090_v50, %v1001_v49  ;;  %v934_v46 = vor.u32 %v1071_v41, %v931_v42  ;;  %v312_v50 = vld [vmem:[#allocation7 + $0x3] sm:$0x7] }
  0x42   :  { %680 = vmatpush.bf16.msrb.mxu3 %v1018_v47  ;;  %v938_v47 = vor.u32 %v1073_v44, %v937_v43  ;;  %v316_v63 = vperm.slane %v312_v50, 2 }
  0x43   :  { %478 = vmatpush.bf16.msrb.mxu1 %v878_v53  ;;  %v1003_v53 = vld [vmem:[#allocation5 + $0x21c] sm:$0xf0]  ;;  %668 = vmatpush.bf16.msrb.mxu2 %v1002_v52 }
  0x44   :  { %v1006_v56 = vor.u32 %v1089_v51, %v1003_v53  ;;  %v314_v51 = vperm.slane %v312_v50, 0 }
  0x45   :  { %466 = vmatpush.bf16.msrb.mxu0 %v862_v59  ;;  %v1087_v59 = vld [vmem:[#allocation5 + $0x200] sm:$0xf0] }
  0x46   :  { %681 = vmatpush.bf16.msrb.mxu3 %v1006_v56  ;;  %v990_v61 = vor.u32 %v1087_v59, %v989_v58  ;;  %v315_v59 = vperm.slane %v312_v50, 1 }
  0x47   :  { %479 = vmatpush.bf16.msrb.mxu1 %v866_v62  ;;  %v991_v62 = vld [vmem:[#allocation5 + $0x204] sm:$0xf0] }
  0x48   :  { %v994_v1 = vor.u32 %v1086_v60, %v991_v62  ;;  %669 = vmatpush.bf16.msrb.mxu2 %v990_v61 }
  0x49   :  { %467 = vmatpush.bf16.msrb.mxu0 %v850_v6  ;;  %v978_v6 = vor.u32 %v1084_v4, %v977_v3 }
  0x4a   :  { %682 = vmatpush.bf16.msrb.mxu3 %v994_v1 }
  0x4b   :  { %480 = vmatpush.bf16.msrb.mxu1 %v854_v7  ;;  %v979_v7 = vld [vmem:[#allocation5 + $0x1ec] sm:$0xf0] }
  0x4c   :  { %v982_v10 = vor.u32 %v1083_v5, %v979_v7  ;;  %670 = vmatpush.bf16.msrb.mxu2 %v978_v6 }
  0x4d   :  { %468 = vmatpush.bf16.msrb.mxu0 %v838_v15  ;;  %v966_v15 = vor.u32 %v1081_v13, %v965_v12 }
  0x4e   :  { %683 = vmatpush.bf16.msrb.mxu3 %v982_v10 }
  0x4f   :  { %481 = vmatpush.bf16.msrb.mxu1 %v842_v16  ;;  %v967_v16 = vld [vmem:[#allocation5 + $0x1d4] sm:$0xf0] }
  0x50   :  { %671 = vmatpush.bf16.msrb.mxu2 %v966_v15 }
  0x51   :  { %693 = vmatpush.bf16.msra.mxu0 %v1022_v48 }
  0x55   :  { %694 = vmatpush.bf16.msra.mxu0 %v1010_v57 }
  0x59   :  { %695 = vmatpush.bf16.msra.mxu0 %v998_v2 }
  0x5d   :  { %696 = vmatpush.bf16.msra.mxu0 %v986_v11 }
  0xad   :  { %v238_v19 = vpop.f32.mrf.mxu0 }
  0xae   :  { %v239_v20 = vadd.f32 %v238_v19, %v95_v18  ;;  %v1082_v18 = vld [vmem:[#allocation5 + $0x1d8] sm:$0xf0]  ;;  %v970_v19 = vor.u32 %v1080_v14, %v967_v16 }
  0xaf   :  { %v251_v22 = vpop.f32.mrf.mxu1 }
  0xb0   :  { %v269_v21 = vsub.f32 0.0, %v239_v20  ;;  %v252_v27 = vadd.f32 %v251_v22, %v96_v24  ;;  %v974_v20 = vor.u32 %v1082_v18, %v973_v17  ;;  %684 = vmatpush.bf16.msrb.mxu3 %v970_v19  ;;  %v1078_v22 = vld [vmem:[#allocation5 + $0x1b8] sm:$0xf0]  ;;  %v534_v18 = vperm.slane %v531_v8, 1 }
  0xb2   :  { %v270_v23 = vmul.f32 1.442695, %v269_v21  ;;  %v268_v32 = vmax.f32 %v252_v27, 0.0  ;;  %697 = vmatpush.bf16.msra.mxu0 %v974_v20  ;;  %v953_v21 = vld [vmem:[#allocation5 + $0x1b0] sm:$0xf] }
  0xb3   :  { %v954_v24 = vor.u32 %v1078_v22, %v953_v21  ;;  %v1079_v27 = vld [vmem:[#allocation5 + $0x1c0] sm:$0xf0]  ;;  %v535_v22 = vperm.slane %v531_v8, 2 }
  0xb4   :  { %1103 = vpow2.f32 %v270_v23  ;;  %v1077_v23 = vld [vmem:[#allocation5 + $0x1b4] sm:$0xf] }
  0xb5   :  { %v264_v25 = vpop.f32.mrf.mxu2  ;;  %v240_v26 = vpop.f32.mrf.mxu0  ;;  %672 = vmatpush.bf16.msrb.mxu2 %v954_v24 }
  0xb6   :  { %v265_v33 = vadd.f32 %v264_v25, %v97_v28  ;;  %v955_v25 = vld [vmem:[#allocation5 + $0x1bc] sm:$0xf0]  ;;  %v961_v26 = vld [vmem:[#allocation5 + $0x1b8] sm:$0xf] }
  0xb7   :  { %v253_v29 = vpop.f32.mrf.mxu1  ;;  %v958_v28 = vor.u32 %v1077_v23, %v955_v25 }
  0xb8   :  { %v274_v35 = vsub.f32 %v268_v32, %v265_v33  ;;  %v962_v29 = vor.u32 %v1079_v27, %v961_v26  ;;  %v1074_v32 = vld [vmem:[#allocation5 + $0x19c] sm:$0xf] }
  0xb9   :  { %685 = vmatpush.bf16.msrb.mxu3 %v958_v28 }
  0xba   :  { %v1104_v30 = vpop.eup %1103  ;;  %698 = vmatpush.bf16.msra.mxu0 %v962_v29 }
  0xbb   :  { %v272_v31 = vadd.f32 1.0, %v1104_v30  ;;  %v941_v30 = vld [vmem:[#allocation5 + $0x198] sm:$0xf] }
  0xbd   :  { %v266_v34 = vpop.f32.mrf.mxu2  ;;  %1105 = vrcp.f32 %v272_v31  ;;  %v1075_v31 = vld [vmem:[#allocation5 + $0x1a0] sm:$0xf0] }
  0xbe   :  { %v943_v34 = vld [vmem:[#allocation5 + $0x1a4] sm:$0xf0] }
  0xc3   :  { %v1106_v36 = vpop.eup %1105 }
  0xc4   :  { %v275_v37 = vmul.f32 %v1106_v36, %v274_v35  ;;  %v949_v35 = vld [vmem:[#allocation5 + $0x1a0] sm:$0xf]  ;;  %v1076_v36 = vld [vmem:[#allocation5 + $0x1a8] sm:$0xf0] }
  0xc6   :  { %v276_v38 = vadd.f32 %v275_v37, %v265_v33  ;;  %v942_v33 = vor.u32 %v1075_v31, %v941_v30  ;;  %v946_v37 = vor.u32 %v1074_v32, %v943_v34 }
  0xc8   :  { %v277_v39 = vpack.c.bf16 %v276_v38, %v276_v38  ;;  %v950_v38 = vor.u32 %v1076_v36, %v949_v35  ;;  %673 = vmatpush.bf16.msrb.mxu2 %v942_v33  ;;  %686 = vmatpush.bf16.msrb.mxu3 %v946_v37 }
  0xca   :  { %456 = vmatmul.bf16.vlgmr.msra.gmra.mxu3 %v277_v39  ;;  %469 = vmatmul.bf16.vlgmr.msrb.gmra.mxu0 %v277_v39 }
  0xcb   :  { %482 = vmatmul.bf16.vlgmr.msrb.gmra.mxu1 %v277_v39  ;;  %v929_v39 = vld [vmem:[#allocation5 + $0x180] sm:$0xf]  ;;  %699 = vmatpush.bf16.msra.mxu0 %v950_v38 }
  0xcc   :  { %v930_v45 = vor.u32 %v1072_v40, %v929_v39  ;;  %687 = vmatpush.bf16.msrb.mxu3 %v934_v46 }
  0xce   :  { %674 = vmatpush.bf16.msrb.mxu2 %v930_v45 }
  0xcf   :  { %700 = vmatpush.bf16.msra.mxu0 %v938_v47 }
 0x147   :  { %v470_v48 = vpop.f32.mrf.mxu0 }
 0x148   :  { %v483_v49 = vpop.f32.mrf.mxu1  ;;  %v471_v61 = vadd.f32 %v470_v48, %v315_v59 }
 0x149   :  { %v484_v1 = vadd.f32 %v483_v49, %v316_v63 }
 0x14a   :  { %v487_v0 = vmax.f32 %v471_v61, 0.0 }
 0x14c   :  { %v493_v2 = vsub.f32 %v487_v0, %v484_v1 }
 0x14d   :  { %v457_v52 = vpop.f32.mrf.mxu3 }
 0x14e   :  { %v458_v53 = vadd.f32 %v457_v52, %v314_v51 }
 0x14f   :  { %v472_v54 = vpop.f32.mrf.mxu0 }
 0x150   :  { %v488_v55 = vsub.f32 0.0, %v458_v53  ;;  %v485_v56 = vpop.f32.mrf.mxu1 }
 0x152   :  { %v489_v57 = vmul.f32 1.442695, %v488_v55 }
 0x154   :  { %1107 = vpow2.f32 %v489_v57 }
 0x155   :  { %v459_v58 = vpop.f32.mrf.mxu3 }
 0x15a   :  { %v1108_v60 = vpop.eup %1107 }
 0x15b   :  { %v491_v62 = vadd.f32 1.0, %v1108_v60 }
 0x15d   :  { %1109 = vrcp.f32 %v491_v62 }
 0x163   :  { %v1110_v3 = vpop.eup %1109 }
 0x164   :  { %v494_v4 = vmul.f32 %v1110_v3, %v493_v2 }
 0x166   :  { %v495_v5 = vadd.f32 %v494_v4, %v484_v1 }
 0x168   :  { %v496_v6 = vpack.c.bf16 %v495_v5, %v495_v5 }
 0x16a   :  { %675 = vmatmul.bf16.vlgmr.msrb.gmra.mxu2 %v496_v6  ;;  %688 = vmatmul.bf16.vlgmr.msrb.gmra.mxu3 %v496_v6 }
 0x16b   :  { %701 = vmatmul.bf16.vlgmr.msra.gmra.mxu0 %v496_v6 }
 0x1e8   :  { %v702_v7 = vpop.f32.mrf.mxu0 }
 0x1e9   :  { %v703_v24 = vadd.f32 %v702_v7, %v535_v22 }
 0x1ed   :  { %v676_v10 = vpop.f32.mrf.mxu2  ;;  %v689_v11 = vpop.f32.mrf.mxu3 }
 0x1ee   :  { %v677_v12 = vadd.f32 %v676_v10, %v533_v9  ;;  %v690_v20 = vadd.f32 %v689_v11, %v534_v18 }
 0x1f0   :  { %v707_v13 = vsub.f32 0.0, %v677_v12  ;;  %v704_v14 = vpop.f32.mrf.mxu0  ;;  %v706_v23 = vmax.f32 %v690_v20, 0.0 }
 0x1f2   :  { %v708_v15 = vmul.f32 1.442695, %v707_v13  ;;  %v712_v25 = vsub.f32 %v706_v23, %v703_v24 }
 0x1f4   :  { %1111 = vpow2.f32 %v708_v15 }
 0x1f5   :  { %v678_v16 = vpop.f32.mrf.mxu2  ;;  %v691_v17 = vpop.f32.mrf.mxu3 }
 0x1fa   :  { %v1112_v19 = vpop.eup %1111 }
 0x1fb   :  { %v710_v21 = vadd.f32 1.0, %v1112_v19 }
 0x1fd   :  { %1113 = vrcp.f32 %v710_v21 }
 0x203   :  { %v1114_v26 = vpop.eup %1113 }
 0x204   :  { %v713_v27 = vmul.f32 %v1114_v26, %v712_v25 }
 0x206   :  { %v714_v28 = vadd.f32 %v713_v27, %v703_v24 }
 0x208   :  { %v715_v29 = vpack.c.bf16 %v714_v28, %v714_v28 }
 0x20a   :  { %716 = vst [vmem:[#allocation8] sm:$0xf] %v715_v29 }
 0x20b   :  { %727 = dma.vmem_to_hbm [thread:$0]  %s723_s2, 64, %s725_s5, [#allocation4]  }
 0x20c   :  { %1215 = dma.done.wait [#allocation4], 64  }
 0x20d   :  { %1216 = vsyncadd [#allocation4], 4294967232 }
 0x20e   :  { %732 = vsyncpa [#allocation3], 1 }
 0x20f   :  { %733 = vsyncpa [#allocation6], 1 }
 0x210   :  { %734 = vsyncpa [#allocation4], 1 }

</bundles_post_ra>
